<compile_context>
chip_gen: v7x
topology: tpu7x:2x2x1
jax: 0.10.0
libtpu: 0.0.40
codegen_flags: <defaults>
</compile_context>

<pallas_src>
import jax
import jax.numpy as jnp
from jax.experimental import pallas as pl
from jax.experimental.pallas import tpu as pltpu

IN_DIM = 784
LATENT_PAD = 128  # 20-wide latent padded to a full lane group


def ae_kernel(x_ref,
              w1_ref, b1_ref, w2_ref, b2_ref, w3_ref, b3_ref,
              w4_ref, b4_ref, w5_ref, b5_ref, w6_ref, b6_ref,
              o_ref):
    """One batch tile of the full autoencoder forward.

    Weights are bf16 (MXU operands); bias add / ReLU / sigmoid run in f32.
    """
    x = x_ref[...]  # (TB, 784) f32

    def dense(h_f32, w_ref, b_ref):
        acc = jnp.dot(h_f32.astype(jnp.bfloat16), w_ref[...],
                      preferred_element_type=jnp.float32)
        return acc + b_ref[...]

    # ----- encoder -----
    h = jnp.maximum(dense(x, w1_ref, b1_ref), 0.0)   # (TB, 256)
    h = jnp.maximum(dense(h, w2_ref, b2_ref), 0.0)   # (TB, 64)
    h = jnp.maximum(dense(h, w3_ref, b3_ref), 0.0)   # (TB, 128) [20 real + 108 zero]

    # ----- decoder -----
    h = jnp.maximum(dense(h, w4_ref, b4_ref), 0.0)   # (TB, 64)
    h = jnp.maximum(dense(h, w5_ref, b5_ref), 0.0)   # (TB, 256)
    h = dense(h, w6_ref, b6_ref)                     # (TB, 784)

    # sigmoid: exp on EUP, approx reciprocal on EUP (clamp avoids exp overflow)
    z = jnp.exp(jnp.minimum(-h, 30.0))
    o_ref[...] = (pl.reciprocal(1.0 + z, approx=True)).astype(o_ref.dtype)


def init_params(key):
    """PyTorch-Linear-style init (uniform(-1/sqrt(fan_in), 1/sqrt(fan_in))), f32."""
    dims = [(784, 256), (256, 64), (64, 20), (20, 64), (64, 256), (256, 784)]
    params = []
    for (fan_in, fan_out) in dims:
        key, kw, kb = jax.random.split(key, 3)
        bound = 1.0 / jnp.sqrt(jnp.float32(fan_in))
        # stored as (in, out) so the kernel computes x @ W
        w = jax.random.uniform(kw, (fan_in, fan_out), jnp.float32, -bound, bound)
        b = jax.random.uniform(kb, (1, fan_out), jnp.float32, -bound, bound)
        params.append((w, b))
    return params


def prepare_kernel_params(params):
    """bf16 weights, f32 biases; latent dim (layer-3 out / layer-4 in) zero-padded to 128."""
    kp = []
    for idx, (w, b) in enumerate(params):
        w = w.astype(jnp.bfloat16)
        b = b.astype(jnp.float32)
        if idx == 2:   # (64, 20) -> (64, 128), (1, 20) -> (1, 128)
            w = jnp.pad(w, ((0, 0), (0, LATENT_PAD - w.shape[1])))
            b = jnp.pad(b, ((0, 0), (0, LATENT_PAD - b.shape[1])))
        if idx == 3:   # (20, 64) -> (128, 64)
            w = jnp.pad(w, ((0, LATENT_PAD - w.shape[0]), (0, 0)))
        kp.append((w, b))
    return kp


def ae_forward(x_nchw, kernel_params, *, tb=256):
    B = x_nchw.shape[0]
    x2d = x_nchw.reshape(B, IN_DIM).astype(jnp.float32)

    # Batch tiling: tile size is sublane-aligned (multiple of 8).  Small
    # batches run as a single whole-batch tile; large batches are split into
    # TB-row tiles and the batch is zero-padded up to a tile multiple.
    B8 = ((B + 7) // 8) * 8
    TB = min(tb, B8)
    num_tiles = pl.cdiv(B8, TB)
    Bp = num_tiles * TB
    if Bp != B:
        x2d = jnp.pad(x2d, ((0, Bp - B), (0, 0)))

    flat_params = []
    for (w, b) in kernel_params:
        flat_params.extend([w, b])

    # Weights/biases: full-array blocks, constant index_map -> resident in VMEM
    # across all grid steps (loaded once).
    weight_specs = [pl.BlockSpec(p.shape, lambda i: (0, 0)) for p in flat_params]

    out2d = pl.pallas_call(
        ae_kernel,
        out_shape=jax.ShapeDtypeStruct((Bp, IN_DIM), jnp.float32),
        grid=(num_tiles,),
        in_specs=[pl.BlockSpec((TB, IN_DIM), lambda i: (i, 0))] + weight_specs,
        out_specs=pl.BlockSpec((TB, IN_DIM), lambda i: (i, 0)),
        compiler_params=pltpu.CompilerParams(
            dimension_semantics=("parallel",),
            vmem_limit_bytes=32 * 1024 * 1024,
        ),
    )(x2d, *flat_params)

    if Bp != B:
        out2d = out2d[:B]
    return out2d.reshape(B, 1, 28, 28)


def ae_forward_ref(x_nchw, params):
    """Pure-JAX reference. Weights quantized through bf16 to mirror kernel
    weight storage; activations kept in f32 (the kernel additionally casts
    activations to bf16 at the dot inputs, hence the loose tolerance)."""
    B = x_nchw.shape[0]
    h = x_nchw.reshape(B, IN_DIM).astype(jnp.float32)
    acts = [jax.nn.relu] * 5 + [jax.nn.sigmoid]
    for (w, b), act in zip(params, acts):
        wq = w.astype(jnp.bfloat16).astype(jnp.float32)
        h = act(h @ wq + b)
    return h.reshape(B, 1, 28, 28)


if __name__ == "__main__":
    key = jax.random.PRNGKey(0)
    key, kx = jax.random.split(key)

    B = 2
    x = jax.random.normal(kx, (B, 1, 28, 28), jnp.float32)

    params = init_params(key)
    kernel_params = prepare_kernel_params(params)

    ae_fwd = jax.jit(ae_forward)
    out = ae_fwd(x, kernel_params)
    out = jax.block_until_ready(out)

    ref = ae_forward_ref(x, params)
    assert out.shape == (B, 1, 28, 28)
    # bf16 matmul operands + approx reciprocal -> loosened tolerance vs f32 ref
    assert jnp.allclose(out, ref, atol=5e-2, rtol=5e-2), (
        "mismatch vs pure-JAX reference: max abs diff = "
        f"{float(jnp.max(jnp.abs(out - ref)))}")

    print("KERNEL_OK")
</pallas_src>

<mosaic_0001>
module attributes {stable_mosaic.version = 11 : i64} {
  func.func @ae_kernel(%arg0: i32, %arg1: memref<8x784xf32, #tpu.memory_space<vmem>>, %arg2: memref<784x256xbf16, #tpu.memory_space<vmem>>, %arg3: memref<1x256xf32, #tpu.memory_space<vmem>>, %arg4: memref<256x64xbf16, #tpu.memory_space<vmem>>, %arg5: memref<1x64xf32, #tpu.memory_space<vmem>>, %arg6: memref<64x128xbf16, #tpu.memory_space<vmem>>, %arg7: memref<1x128xf32, #tpu.memory_space<vmem>>, %arg8: memref<128x64xbf16, #tpu.memory_space<vmem>>, %arg9: memref<1x64xf32, #tpu.memory_space<vmem>>, %arg10: memref<64x256xbf16, #tpu.memory_space<vmem>>, %arg11: memref<1x256xf32, #tpu.memory_space<vmem>>, %arg12: memref<256x784xbf16, #tpu.memory_space<vmem>>, %arg13: memref<1x784xf32, #tpu.memory_space<vmem>>, %arg14: memref<8x784xf32, #tpu.memory_space<vmem>>) attributes {dimension_semantics = [#tpu.dimension_semantics<parallel>], iteration_bounds = array<i64: 1>, scalar_prefetch = 0 : i64, scratch_operands = 0 : i64, tpu.core_type = #tpu.core_type<tc>, window_params = [{transform_indices = @transform_0, window_bounds = array<i64: 8, 784>}, {pipeline_mode = #tpu.pipeline_mode<synchronous>, transform_indices = @transform_1, window_bounds = array<i64: 784, 256>}, {pipeline_mode = #tpu.pipeline_mode<synchronous>, transform_indices = @transform_2, window_bounds = array<i64: 1, 256>}, {pipeline_mode = #tpu.pipeline_mode<synchronous>, transform_indices = @transform_3, window_bounds = array<i64: 256, 64>}, {pipeline_mode = #tpu.pipeline_mode<synchronous>, transform_indices = @transform_4, window_bounds = array<i64: 1, 64>}, {pipeline_mode = #tpu.pipeline_mode<synchronous>, transform_indices = @transform_5, window_bounds = array<i64: 64, 128>}, {pipeline_mode = #tpu.pipeline_mode<synchronous>, transform_indices = @transform_6, window_bounds = array<i64: 1, 128>}, {pipeline_mode = #tpu.pipeline_mode<synchronous>, transform_indices = @transform_7, window_bounds = array<i64: 128, 64>}, {pipeline_mode = #tpu.pipeline_mode<synchronous>, transform_indices = @transform_8, window_bounds = array<i64: 1, 64>}, {pipeline_mode = #tpu.pipeline_mode<synchronous>, transform_indices = @transform_9, window_bounds = array<i64: 64, 256>}, {pipeline_mode = #tpu.pipeline_mode<synchronous>, transform_indices = @transform_10, window_bounds = array<i64: 1, 256>}, {pipeline_mode = #tpu.pipeline_mode<synchronous>, transform_indices = @transform_11, window_bounds = array<i64: 256, 784>}, {pipeline_mode = #tpu.pipeline_mode<synchronous>, transform_indices = @transform_12, window_bounds = array<i64: 1, 784>}, {transform_indices = @transform_13, window_bounds = array<i64: 8, 784>}]} {
    %c0 = arith.constant 0 : index
    %c0_0 = arith.constant 0 : index
    %0 = vector.load %arg1[%c0, %c0_0] : memref<8x784xf32, #tpu.memory_space<vmem>>, vector<8x784xf32>
    %1 = arith.truncf %0 : vector<8x784xf32> to vector<8x784xbf16>
    %c0_1 = arith.constant 0 : index
    %c0_2 = arith.constant 0 : index
    %2 = vector.load %arg2[%c0_1, %c0_2] : memref<784x256xbf16, #tpu.memory_space<vmem>>, vector<784x256xbf16>
    %cst = arith.constant dense<0.000000e+00> : vector<8x256xf32>
    %3 = tpu.matmul %1, %2, %cst {dimension_numbers = #tpu.dot_dimension_numbers<[1], [0], [0], [1], [0, 0, 1, 1], [], []>} : vector<8x784xbf16>, vector<784x256xbf16>, vector<8x256xf32> -> vector<8x256xf32>
    %c0_3 = arith.constant 0 : index
    %c0_4 = arith.constant 0 : index
    %4 = vector.load %arg3[%c0_3, %c0_4] : memref<1x256xf32, #tpu.memory_space<vmem>>, vector<1x256xf32>
    %5 = vector.broadcast %4 : vector<1x256xf32> to vector<8x256xf32>
    %6 = arith.addf %3, %5 : vector<8x256xf32>
    %cst_5 = arith.constant 0.000000e+00 : f32
    %7 = vector.broadcast %cst_5 : f32 to vector<8x256xf32>
    %8 = arith.maximumf %6, %7 : vector<8x256xf32>
    %9 = arith.truncf %8 : vector<8x256xf32> to vector<8x256xbf16>
    %c0_6 = arith.constant 0 : index
    %c0_7 = arith.constant 0 : index
    %10 = vector.load %arg4[%c0_6, %c0_7] : memref<256x64xbf16, #tpu.memory_space<vmem>>, vector<256x64xbf16>
    %cst_8 = arith.constant dense<0.000000e+00> : vector<8x64xf32>
    %11 = tpu.matmul %9, %10, %cst_8 {dimension_numbers = #tpu.dot_dimension_numbers<[1], [0], [0], [1], [0, 0, 1, 1], [], []>} : vector<8x256xbf16>, vector<256x64xbf16>, vector<8x64xf32> -> vector<8x64xf32>
    %c0_9 = arith.constant 0 : index
    %c0_10 = arith.constant 0 : index
    %12 = vector.load %arg5[%c0_9, %c0_10] : memref<1x64xf32, #tpu.memory_space<vmem>>, vector<1x64xf32>
    %13 = vector.broadcast %12 : vector<1x64xf32> to vector<8x64xf32>
    %14 = arith.addf %11, %13 : vector<8x64xf32>
    %cst_11 = arith.constant 0.000000e+00 : f32
    %15 = vector.broadcast %cst_11 : f32 to vector<8x64xf32>
    %16 = arith.maximumf %14, %15 : vector<8x64xf32>
    %17 = arith.truncf %16 : vector<8x64xf32> to vector<8x64xbf16>
    %c0_12 = arith.constant 0 : index
    %c0_13 = arith.constant 0 : index
    %18 = vector.load %arg6[%c0_12, %c0_13] : memref<64x128xbf16, #tpu.memory_space<vmem>>, vector<64x128xbf16>
    %cst_14 = arith.constant dense<0.000000e+00> : vector<8x128xf32>
    %19 = tpu.matmul %17, %18, %cst_14 {dimension_numbers = #tpu.dot_dimension_numbers<[1], [0], [0], [1], [0, 0, 1, 1], [], []>} : vector<8x64xbf16>, vector<64x128xbf16>, vector<8x128xf32> -> vector<8x128xf32>
    %c0_15 = arith.constant 0 : index
    %c0_16 = arith.constant 0 : index
    %20 = vector.load %arg7[%c0_15, %c0_16] : memref<1x128xf32, #tpu.memory_space<vmem>>, vector<1x128xf32>
    %21 = vector.broadcast %20 : vector<1x128xf32> to vector<8x128xf32>
    %22 = arith.addf %19, %21 : vector<8x128xf32>
    %cst_17 = arith.constant 0.000000e+00 : f32
    %23 = vector.broadcast %cst_17 : f32 to vector<8x128xf32>
    %24 = arith.maximumf %22, %23 : vector<8x128xf32>
    %25 = arith.truncf %24 : vector<8x128xf32> to vector<8x128xbf16>
    %c0_18 = arith.constant 0 : index
    %c0_19 = arith.constant 0 : index
    %26 = vector.load %arg8[%c0_18, %c0_19] : memref<128x64xbf16, #tpu.memory_space<vmem>>, vector<128x64xbf16>
    %cst_20 = arith.constant dense<0.000000e+00> : vector<8x64xf32>
    %27 = tpu.matmul %25, %26, %cst_20 {dimension_numbers = #tpu.dot_dimension_numbers<[1], [0], [0], [1], [0, 0, 1, 1], [], []>} : vector<8x128xbf16>, vector<128x64xbf16>, vector<8x64xf32> -> vector<8x64xf32>
    %c0_21 = arith.constant 0 : index
    %c0_22 = arith.constant 0 : index
    %28 = vector.load %arg9[%c0_21, %c0_22] : memref<1x64xf32, #tpu.memory_space<vmem>>, vector<1x64xf32>
    %29 = vector.broadcast %28 : vector<1x64xf32> to vector<8x64xf32>
    %30 = arith.addf %27, %29 : vector<8x64xf32>
    %cst_23 = arith.constant 0.000000e+00 : f32
    %31 = vector.broadcast %cst_23 : f32 to vector<8x64xf32>
    %32 = arith.maximumf %30, %31 : vector<8x64xf32>
    %33 = arith.truncf %32 : vector<8x64xf32> to vector<8x64xbf16>
    %c0_24 = arith.constant 0 : index
    %c0_25 = arith.constant 0 : index
    %34 = vector.load %arg10[%c0_24, %c0_25] : memref<64x256xbf16, #tpu.memory_space<vmem>>, vector<64x256xbf16>
    %cst_26 = arith.constant dense<0.000000e+00> : vector<8x256xf32>
    %35 = tpu.matmul %33, %34, %cst_26 {dimension_numbers = #tpu.dot_dimension_numbers<[1], [0], [0], [1], [0, 0, 1, 1], [], []>} : vector<8x64xbf16>, vector<64x256xbf16>, vector<8x256xf32> -> vector<8x256xf32>
    %c0_27 = arith.constant 0 : index
    %c0_28 = arith.constant 0 : index
    %36 = vector.load %arg11[%c0_27, %c0_28] : memref<1x256xf32, #tpu.memory_space<vmem>>, vector<1x256xf32>
    %37 = vector.broadcast %36 : vector<1x256xf32> to vector<8x256xf32>
    %38 = arith.addf %35, %37 : vector<8x256xf32>
    %cst_29 = arith.constant 0.000000e+00 : f32
    %39 = vector.broadcast %cst_29 : f32 to vector<8x256xf32>
    %40 = arith.maximumf %38, %39 : vector<8x256xf32>
    %41 = arith.truncf %40 : vector<8x256xf32> to vector<8x256xbf16>
    %c0_30 = arith.constant 0 : index
    %c0_31 = arith.constant 0 : index
    %42 = vector.load %arg12[%c0_30, %c0_31] : memref<256x784xbf16, #tpu.memory_space<vmem>>, vector<256x784xbf16>
    %cst_32 = arith.constant dense<0.000000e+00> : vector<8x784xf32>
    %43 = tpu.matmul %41, %42, %cst_32 {dimension_numbers = #tpu.dot_dimension_numbers<[1], [0], [0], [1], [0, 0, 1, 1], [], []>} : vector<8x256xbf16>, vector<256x784xbf16>, vector<8x784xf32> -> vector<8x784xf32>
    %c0_33 = arith.constant 0 : index
    %c0_34 = arith.constant 0 : index
    %44 = vector.load %arg13[%c0_33, %c0_34] : memref<1x784xf32, #tpu.memory_space<vmem>>, vector<1x784xf32>
    %45 = vector.broadcast %44 : vector<1x784xf32> to vector<8x784xf32>
    %46 = arith.addf %43, %45 : vector<8x784xf32>
    %cst_35 = arith.constant 0.000000e+00 : f32
    %47 = vector.broadcast %cst_35 : f32 to vector<8x784xf32>
    %48 = arith.subf %47, %46 : vector<8x784xf32>
    %cst_36 = arith.constant 3.000000e+01 : f32
    %49 = vector.broadcast %cst_36 : f32 to vector<8x784xf32>
    %50 = arith.minimumf %48, %49 : vector<8x784xf32>
    %51 = math.exp %50 : vector<8x784xf32>
    %cst_37 = arith.constant 1.000000e+00 : f32
    %52 = vector.broadcast %cst_37 : f32 to vector<8x784xf32>
    %53 = arith.addf %52, %51 : vector<8x784xf32>
    %54 = tpu.reciprocal %53 {approx = true} : vector<8x784xf32> -> vector<8x784xf32>
    %c0_38 = arith.constant 0 : index
    %c0_39 = arith.constant 0 : index
    %55 = vector.load %arg14[%c0_38, %c0_39] : memref<8x784xf32, #tpu.memory_space<vmem>>, vector<8x784xf32>
    tpu.vector_store %arg14[%c0_38, %c0_39], %54 {strides = array<i32>} : memref<8x784xf32, #tpu.memory_space<vmem>>, vector<8x784xf32>,
    return
  }
  func.func @transform_0(%arg0: i32) -> (i32, i32) {
    %c0_i32 = arith.constant 0 : i32
    %c0_i32_0 = arith.constant 0 : i32
    return %arg0, %c0_i32 : i32, i32
  }
  func.func @transform_1(%arg0: i32) -> (i32, i32) {
    %c0_i32 = arith.constant 0 : i32
    %c0_i32_0 = arith.constant 0 : i32
    %c0_i32_1 = arith.constant 0 : i32
    return %c0_i32, %c0_i32_0 : i32, i32
  }
  func.func @transform_2(%arg0: i32) -> (i32, i32) {
    %c0_i32 = arith.constant 0 : i32
    %c0_i32_0 = arith.constant 0 : i32
    %c0_i32_1 = arith.constant 0 : i32
    return %c0_i32, %c0_i32_0 : i32, i32
  }
  func.func @transform_3(%arg0: i32) -> (i32, i32) {
    %c0_i32 = arith.constant 0 : i32
    %c0_i32_0 = arith.constant 0 : i32
    %c0_i32_1 = arith.constant 0 : i32
    return %c0_i32, %c0_i32_0 : i32, i32
  }
  func.func @transform_4(%arg0: i32) -> (i32, i32) {
    %c0_i32 = arith.constant 0 : i32
    %c0_i32_0 = arith.constant 0 : i32
    %c0_i32_1 = arith.constant 0 : i32
    return %c0_i32, %c0_i32_0 : i32, i32
  }
  func.func @transform_5(%arg0: i32) -> (i32, i32) {
    %c0_i32 = arith.constant 0 : i32
    %c0_i32_0 = arith.constant 0 : i32
    %c0_i32_1 = arith.constant 0 : i32
    return %c0_i32, %c0_i32_0 : i32, i32
  }
  func.func @transform_6(%arg0: i32) -> (i32, i32) {
    %c0_i32 = arith.constant 0 : i32
    %c0_i32_0 = arith.constant 0 : i32
    %c0_i32_1 = arith.constant 0 : i32
    return %c0_i32, %c0_i32_0 : i32, i32
  }
  func.func @transform_7(%arg0: i32) -> (i32, i32) {
    %c0_i32 = arith.constant 0 : i32
    %c0_i32_0 = arith.constant 0 : i32
    %c0_i32_1 = arith.constant 0 : i32
    return %c0_i32, %c0_i32_0 : i32, i32
  }
  func.func @transform_8(%arg0: i32) -> (i32, i32) {
    %c0_i32 = arith.constant 0 : i32
    %c0_i32_0 = arith.constant 0 : i32
    %c0_i32_1 = arith.constant 0 : i32
    return %c0_i32, %c0_i32_0 : i32, i32
  }
  func.func @transform_9(%arg0: i32) -> (i32, i32) {
    %c0_i32 = arith.constant 0 : i32
    %c0_i32_0 = arith.constant 0 : i32
    %c0_i32_1 = arith.constant 0 : i32
    return %c0_i32, %c0_i32_0 : i32, i32
  }
  func.func @transform_10(%arg0: i32) -> (i32, i32) {
    %c0_i32 = arith.constant 0 : i32
    %c0_i32_0 = arith.constant 0 : i32
    %c0_i32_1 = arith.constant 0 : i32
    return %c0_i32, %c0_i32_0 : i32, i32
  }
  func.func @transform_11(%arg0: i32) -> (i32, i32) {
    %c0_i32 = arith.constant 0 : i32
    %c0_i32_0 = arith.constant 0 : i32
    %c0_i32_1 = arith.constant 0 : i32
    return %c0_i32, %c0_i32_0 : i32, i32
  }
  func.func @transform_12(%arg0: i32) -> (i32, i32) {
    %c0_i32 = arith.constant 0 : i32
    %c0_i32_0 = arith.constant 0 : i32
    %c0_i32_1 = arith.constant 0 : i32
    return %c0_i32, %c0_i32_0 : i32, i32
  }
  func.func @transform_13(%arg0: i32) -> (i32, i32) {
    %c0_i32 = arith.constant 0 : i32
    %c0_i32_0 = arith.constant 0 : i32
    return %arg0, %c0_i32 : i32, i32
  }
}

</mosaic_0001>

<bundles_post_ra>
// kernel: ae_forward.1
= control target key start
LH: loop header
LB: loop body
LE: loop exit
PB: predicated region body
PF: predicated region fallthrough
CT: control target
= control target key end

     0   :  { %v3003_v42 = vmov 0   ;;  %vm659_vm0 = vcmask 130048   ;;  %vm3005_vm1 = vmmov 0   ;;  %vm1047_vm2 = vcmask 523264   ;;  %s3936_s1 = inlined_call_operand.vmem [shape: bf16[784,256], index: 1, kind: input, shape index: {}]   ;;  %s3937_s0 = inlined_call_operand.vmem [shape: f32[8,784], index: 0, kind: input, shape index: {}]   ;;  %s3938_s3 = inlined_call_operand.vmem [shape: bf16[256,64], index: 3, kind: input, shape index: {}]   ;;  %s3939_s5 = inlined_call_operand.vmem [shape: bf16[64,128], index: 5, kind: input, shape index: {}]   ;;  %s3940_s2 = inlined_call_operand.vmem [shape: f32[1,256], index: 2, kind: input, shape index: {}]   ;;  %s3941_s7 = inlined_call_operand.vmem [shape: bf16[128,64], index: 7, kind: input, shape index: {}]   ;;  %s3942_s4 = inlined_call_operand.vmem [shape: f32[1,64], index: 4, kind: input, shape index: {}]   ;;  %s3943_s9 = inlined_call_operand.vmem [shape: bf16[64,256], index: 9, kind: input, shape index: {}]   ;;  %s3944_s6 = inlined_call_operand.vmem [shape: f32[1,128], index: 6, kind: input, shape index: {}]   ;;  %s3945_s11 = inlined_call_operand.vmem [shape: bf16[256,784], index: 11, kind: input, shape index: {}]   ;;  %s3946_s8 = inlined_call_operand.vmem [shape: f32[1,64], index: 8, kind: input, shape index: {}]   ;;  %s3947_s10 = inlined_call_operand.vmem [shape: f32[1,256], index: 10, kind: input, shape index: {}]   ;;  %s3948_s12 = inlined_call_operand.vmem [shape: f32[1,784], index: 12, kind: input, shape index: {}]   ;;  %s3949_s13 = inlined_call_operand.vmem [shape: f32[8,784], index: 13, kind: output, shape index: {}]  }
   0x1   :  { %v2628_v0 = vld [vmem:[%s3936_s1 + $0x4] ss:$8 sps:$4 sm:$0xff]   ;;  %v2630_v1 = vld [vmem:[%s3936_s1] ss:$8 sps:$4 sm:$0xff]   ;;  %v2631_v2 = vld [vmem:[%s3936_s1 + $0x14] ss:$8 sps:$4 sm:$0xff]   ;;  %818 = vmatprep.mubr.bf16.mxu1 %v3003_v42 }
   0x2   :  { %663 = vmatprep.subr.bf16.mxu0 %v2628_v0  ;;  %v2633_v3 = vld [vmem:[%s3936_s1 + $0x10] ss:$8 sps:$4 sm:$0xff]   ;;  %v2634_v4 = vld [vmem:[%s3936_s1 + $0x24] ss:$8 sps:$4 sm:$0xff]   ;;  %v2636_v5 = vld [vmem:[%s3936_s1 + $0x20] ss:$8 sps:$4 sm:$0xff]  }
   0x3   :  { %664 = vmatpush1.bf16.msra.mxu0 %v2630_v1  ;;  %v2637_v6 = vld [vmem:[%s3936_s1 + $0x34] ss:$8 sps:$4 sm:$0xff]   ;;  %v2639_v7 = vld [vmem:[%s3936_s1 + $0x30] ss:$8 sps:$4 sm:$0xff]   ;;  %v2640_v8 = vld [vmem:[%s3936_s1 + $0x44] ss:$8 sps:$4 sm:$0xff]  }
   0x4   :  { %665 = vmatprep.subr.bf16.mxu0 %v2631_v2  ;;  %v2642_v9 = vld [vmem:[%s3936_s1 + $0x40] ss:$8 sps:$4 sm:$0xff]   ;;  %v2643_v10 = vld [vmem:[%s3936_s1 + $0x54] ss:$8 sps:$4 sm:$0xff]   ;;  %v2645_v11 = vld [vmem:[%s3936_s1 + $0x50] ss:$8 sps:$4 sm:$0xff]  }
   0x5   :  { %v2646_v12 = vld [vmem:[%s3936_s1 + $0x64] ss:$8 sps:$4 sm:$0xff]   ;;  %v2648_v15 = vld [vmem:[%s3936_s1 + $0x60] ss:$8 sps:$4 sm:$0xff]   ;;  %v2649_v16 = vld [vmem:[%s3936_s1 + $0x74] ss:$8 sps:$4 sm:$0xff]  }
   0x6   :  { %v46_v13 = vld [vmem:[%s3937_s0 + $0x8] sm:$0xff]  ;;  %v2651_v17 = vld [vmem:[%s3936_s1 + $0x70] ss:$8 sps:$4 sm:$0xff]   ;;  %v2655_v20 = vld [vmem:[%s3936_s1 + $0x94] ss:$8 sps:$4 sm:$0xff]  }
   0x7   :  { %666 = vmatpush1.bf16.msra.mxu0 %v2633_v3  ;;  %v53_v14 = vpack.c.bf16 %v46_v13, %v46_v13  ;;  %v2652_v18 = vld [vmem:[%s3936_s1 + $0x84] ss:$8 sps:$4 sm:$0xff]   ;;  %v2654_v19 = vld [vmem:[%s3936_s1 + $0x80] ss:$8 sps:$4 sm:$0xff]   ;;  %v2657_v21 = vld [vmem:[%s3936_s1 + $0x90] ss:$8 sps:$4 sm:$0xff]  }
   0x8   :  { %667 = vmatprep.subr.bf16.mxu0 %v2634_v4  ;;  %v2658_v22 = vld [vmem:[%s3936_s1 + $0xa4] ss:$8 sps:$4 sm:$0xff]   ;;  %v2660_v23 = vld [vmem:[%s3936_s1 + $0xa0] ss:$8 sps:$4 sm:$0xff]   ;;  %v2661_v24 = vld [vmem:[%s3936_s1 + $0xb4] ss:$8 sps:$4 sm:$0xff]  }
   0x9   :  { %695 = vmatprep.mubr.bf16.mxu0 %v53_v14  ;;  %v2663_v25 = vld [vmem:[%s3936_s1 + $0xb0] ss:$8 sps:$4 sm:$0xff]   ;;  %v2664_v26 = vld [vmem:[%s3936_s1 + $0xc4] ss:$8 sps:$4 sm:$0xff]   ;;  %v2666_v27 = vld [vmem:[%s3936_s1 + $0xc0] ss:$8 sps:$4 sm:$0xff]  }
   0xa   :  { %v2667_v28 = vld [vmem:[%s3936_s1 + $0xd4] ss:$8 sps:$4 sm:$0xff]   ;;  %v2669_v29 = vld [vmem:[%s3936_s1 + $0xd0] ss:$8 sps:$4 sm:$0xff]   ;;  %v2670_v30 = vld [vmem:[%s3936_s1 + $0xe4] ss:$8 sps:$4 sm:$0xff]  }
   0xb   :  { %668 = vmatpush1.bf16.msra.mxu0 %v2636_v5  ;;  %v2672_v31 = vld [vmem:[%s3936_s1 + $0xe0] ss:$8 sps:$4 sm:$0xff]   ;;  %v2673_v32 = vld [vmem:[%s3936_s1 + $0xf4] ss:$8 sps:$4 sm:$0xff]   ;;  %v2675_v33 = vld [vmem:[%s3936_s1 + $0xf0] ss:$8 sps:$4 sm:$0xff]  }
   0xc   :  { %669 = vmatprep.subr.bf16.mxu0 %v2637_v6  ;;  %v2678_v34 = vld [vmem:[%s3936_s1 + $0x104] ss:$8 sps:$4 sm:$0xff]   ;;  %v48_v36 = vld [vmem:[%s3937_s0 + $0x18] sm:$0xff]  ;;  %v2676_v38 = vld [vmem:[%s3936_s1 + $0x100] ss:$8 sps:$4 sm:$0xff]  }
   0xd   :  { %v45_v35 = vld [vmem:[%s3937_s0] sm:$0xff]  ;;  %v2681_v39 = vld [vmem:[%s3936_s1 + $0x114] ss:$8 sps:$4 sm:$0xff]   ;;  %v55_v40 = vpack.c.bf16 %v48_v36, %v48_v36  ;;  %v2679_v43 = vld [vmem:[%s3936_s1 + $0x110] ss:$8 sps:$4 sm:$0xff]  }
   0xe   :  { %v52_v37 = vpack.c.bf16 %v45_v35, %v45_v35  ;;  %v2769_v41 = vld [vmem:[%s3936_s1 + $0x304] ss:$8 sps:$4 sm:$0xff]   ;;  %v2774_v44 = vld [vmem:[%s3936_s1 + $0x300] ss:$8 sps:$4 sm:$0xff]   ;;  %v51_v46 = vld [vmem:[%s3937_s0 + $0x30] sm:$0xff] }
   0xf   :  { %670 = vmatpush1.bf16.msra.mxu0 %v2639_v7  ;;  %786 = vmatprep.subr.bf16.mxu1 %v2769_v41  ;;  %v2684_v45 = vld [vmem:[%s3936_s1 + $0x124] ss:$8 sps:$4 sm:$0xff]   ;;  %v58_v47 = vpack.c.bf16 %v51_v46, %v51_v46  ;;  %v2682_v49 = vld [vmem:[%s3936_s1 + $0x120] ss:$8 sps:$4 sm:$0xff]   ;;  %v2687_v52 = vld [vmem:[%s3936_s1 + $0x134] ss:$8 sps:$4 sm:$0xff]  }
  0x10   :  { %671 = vmatprep.subr.bf16.mxu0 %v2640_v8  ;;  %787 = vmatpush1.bf16.msra.mxu1 %v2774_v44  ;;  %v2775_v48 = vld [vmem:[%s3938_s3 + $0x40] sm:$0xff]   ;;  %v2777_v51 = vld [vmem:[%s3938_s3 + $0x48] sm:$0xff]   ;;  %v2779_v54 = vld [vmem:[%s3938_s3 + $0x50] sm:$0xff]  }
  0x11   :  { %v2776_v50 = vld [vmem:[%s3938_s3] sm:$0xff]   ;;  %2523 = vmatprep.subr.bf16.mxu1 %v2775_v48  ;;  %v2778_v53 = vld [vmem:[%s3938_s3 + $0x8] sm:$0xff]   ;;  %v2685_v55 = vld [vmem:[%s3936_s1 + $0x130] ss:$8 sps:$4 sm:$0xff]  }
  0x12   :  { %v2690_v56 = vld [vmem:[%s3936_s1 + $0x144] ss:$8 sps:$4 sm:$0xff]   ;;  %v2780_v57 = vld [vmem:[%s3938_s3 + $0x10] sm:$0xff]   ;;  %v2688_v58 = vld [vmem:[%s3936_s1 + $0x140] ss:$8 sps:$4 sm:$0xff]  }
  0x13   :  { %672 = vmatpush1.bf16.msra.mxu0 %v2642_v9  ;;  %2369 = vmatmul.mubr.msk.bf16.vlgmr.msra.gmra.mrb[0].mxu1 %vm659_vm0, %v58_v47  ;;  %v2781_v59 = vld [vmem:[%s3938_s3 + $0x58] sm:$0xff]   ;;  %v2783_v62 = vld [vmem:[%s3938_s3 + $0x60] sm:$0xff]  }
  0x14   :  { %673 = vmatprep.subr.bf16.mxu0 %v2643_v10  ;;  %2524 = vmatpush3.bf16.msra.mxu1 %v2776_v50  ;;  %v2693_v60 = vld [vmem:[%s3936_s1 + $0x154] ss:$8 sps:$4 sm:$0xff]   ;;  %v2691_v63 = vld [vmem:[%s3936_s1 + $0x150] ss:$8 sps:$4 sm:$0xff]   ;;  %v2696_v0 = vld [vmem:[%s3936_s1 + $0x164] ss:$8 sps:$4 sm:$0xff]  }
  0x15   :  { %2525 = vmatprep.subr.bf16.mxu1 %v2777_v51  ;;  %v2782_v61 = vld [vmem:[%s3938_s3 + $0x18] sm:$0xff]   ;;  %v2784_v1 = vld [vmem:[%s3938_s3 + $0x20] sm:$0xff]  }
  0x16   :  { %v2694_v2 = vld [vmem:[%s3936_s1 + $0x160] ss:$8 sps:$4 sm:$0xff]   ;;  %v2699_v3 = vld [vmem:[%s3936_s1 + $0x174] ss:$8 sps:$4 sm:$0xff]   ;;  %v2697_v4 = vld [vmem:[%s3936_s1 + $0x170] ss:$8 sps:$4 sm:$0xff]  }
  0x17   :  { %674 = vmatpush1.bf16.msra.mxu0 %v2645_v11  ;;  %v2702_v5 = vld [vmem:[%s3936_s1 + $0x184] ss:$8 sps:$4 sm:$0xff]   ;;  %v2700_v6 = vld [vmem:[%s3936_s1 + $0x180] ss:$8 sps:$4 sm:$0xff]   ;;  %v2705_v7 = vld [vmem:[%s3936_s1 + $0x194] ss:$8 sps:$4 sm:$0xff]  }
  0x18   :  { %675 = vmatprep.subr.bf16.mxu0 %v2646_v12  ;;  %2526 = vmatpush3.bf16.msra.mxu1 %v2778_v53  ;;  %v2703_v8 = vld [vmem:[%s3936_s1 + $0x190] ss:$8 sps:$4 sm:$0xff]   ;;  %v2708_v9 = vld [vmem:[%s3936_s1 + $0x1a4] ss:$8 sps:$4 sm:$0xff]   ;;  %v2706_v10 = vld [vmem:[%s3936_s1 + $0x1a0] ss:$8 sps:$4 sm:$0xff]  }
  0x19   :  { %2527 = vmatprep.subr.bf16.mxu1 %v2779_v54  ;;  %v2711_v11 = vld [vmem:[%s3936_s1 + $0x1b4] ss:$8 sps:$4 sm:$0xff]   ;;  %v2709_v12 = vld [vmem:[%s3936_s1 + $0x1b0] ss:$8 sps:$4 sm:$0xff]   ;;  %v2714_v13 = vld [vmem:[%s3936_s1 + $0x1c4] ss:$8 sps:$4 sm:$0xff]  }
  0x1a   :  { %v2712_v14 = vld [vmem:[%s3936_s1 + $0x1c0] ss:$8 sps:$4 sm:$0xff]   ;;  %v2741_v35 = vld [vmem:[%s3936_s1 + $0x254] ss:$8 sps:$4 sm:$0xff]   ;;  %v2739_v36 = vld [vmem:[%s3936_s1 + $0x250] ss:$8 sps:$4 sm:$0xff]  }
  0x1b   :  { %676 = vmatpush1.bf16.msra.mxu0 %v2648_v15  ;;  %v2717_v15 = vld [vmem:[%s3936_s1 + $0x1d4] ss:$8 sps:$4 sm:$0xff]   ;;  %v2745_v41 = vld [vmem:[%s3936_s1 + $0x270] ss:$8 sps:$4 sm:$0xff]   ;;  %v2748_v44 = vld [vmem:[%s3936_s1 + $0x280] ss:$8 sps:$4 sm:$0xff]  }
  0x1c   :  { %677 = vmatprep.subr.bf16.mxu0 %v2649_v16  ;;  %2528 = vmatpush3.bf16.msra.mxu1 %v2780_v57  ;;  %v2715_v16 = vld [vmem:[%s3936_s1 + $0x1d0] ss:$8 sps:$4 sm:$0xff]   ;;  %v2756_v47 = vld [vmem:[%s3936_s1 + $0x2a4] ss:$8 sps:$4 sm:$0xff]   ;;  %v2754_v48 = vld [vmem:[%s3936_s1 + $0x2a0] ss:$8 sps:$4 sm:$0xff]  }
  0x1d   :  { %2529 = vmatprep.subr.bf16.mxu1 %v2781_v59  ;;  %v2751_v46 = vld [vmem:[%s3936_s1 + $0x290] ss:$8 sps:$4 sm:$0xff]   ;;  %v2762_v51 = vld [vmem:[%s3936_s1 + $0x2c4] ss:$8 sps:$4 sm:$0xff]   ;;  %v2765_v53 = vld [vmem:[%s3936_s1 + $0x2d4] ss:$8 sps:$4 sm:$0xff]  }
  0x1e   :  { %v2757_v50 = vld [vmem:[%s3936_s1 + $0x2b0] ss:$8 sps:$4 sm:$0xff]   ;;  %v2773_v57 = vld [vmem:[%s3936_s1 + $0x2f4] ss:$8 sps:$4 sm:$0xff]   ;;  %v49_v59 = vld [vmem:[%s3937_s0 + $0x20] sm:$0xff] }
  0x1f   :  { %678 = vmatpush1.bf16.msra.mxu0 %v2651_v17  ;;  %v2720_v17 = vld [vmem:[%s3936_s1 + $0x1e4] ss:$8 sps:$4 sm:$0xff]   ;;  %v2763_v54 = vld [vmem:[%s3936_s1 + $0x2d0] ss:$8 sps:$4 sm:$0xff]  }
  0x20   :  { %679 = vmatprep.subr.bf16.mxu0 %v2652_v18  ;;  %2530 = vmatpush3.bf16.msra.mxu1 %v2782_v61  ;;  %v2718_v18 = vld [vmem:[%s3936_s1 + $0x1e0] ss:$8 sps:$4 sm:$0xff]  }
  0x21   :  { %2531 = vmatprep.subr.bf16.mxu1 %v2783_v62  ;;  %v2786_v61 = vld [vmem:[%s3938_s3 + $0x28] sm:$0xff]   ;;  %v2787_v62 = vld [vmem:[%s3938_s3 + $0x70] sm:$0xff]  }
  0x23   :  { %680 = vmatpush1.bf16.msra.mxu0 %v2654_v19  ;;  %v2723_v19 = vld [vmem:[%s3936_s1 + $0x1f4] ss:$8 sps:$4 sm:$0xff]  }
  0x24   :  { %681 = vmatprep.subr.bf16.mxu0 %v2655_v20  ;;  %2532 = vmatpush3.bf16.msra.mxu1 %v2784_v1  ;;  %v2721_v20 = vld [vmem:[%s3936_s1 + $0x1f0] ss:$8 sps:$4 sm:$0xff]  }
  0x25   :  { %v2789_v1 = vld [vmem:[%s3938_s3 + $0x78] sm:$0xff]  }
  0x27   :  { %682 = vmatpush1.bf16.msra.mxu0 %v2657_v21  ;;  %v47_v21 = vld [vmem:[%s3937_s0 + $0x10] sm:$0xff] }
  0x28   :  { %683 = vmatprep.subr.bf16.mxu0 %v2658_v22  ;;  %v2726_v22 = vld [vmem:[%s3936_s1 + $0x204] ss:$8 sps:$4 sm:$0xff]  }
  0x2b   :  { %684 = vmatpush1.bf16.msra.mxu0 %v2660_v23  ;;  %v50_v23 = vld [vmem:[%s3937_s0 + $0x28] sm:$0xff] }
  0x2c   :  { %685 = vmatprep.subr.bf16.mxu0 %v2661_v24  ;;  %v54_v24 = vpack.c.bf16 %v47_v21, %v47_v21 }
  0x2f   :  { %686 = vmatpush1.bf16.msra.mxu0 %v2663_v25  ;;  %v2724_v25 = vld [vmem:[%s3936_s1 + $0x200] ss:$8 sps:$4 sm:$0xff]  }
  0x30   :  { %687 = vmatprep.subr.bf16.mxu0 %v2664_v26  ;;  %v57_v26 = vpack.c.bf16 %v50_v23, %v50_v23 }
  0x33   :  { %688 = vmatpush1.bf16.msra.mxu0 %v2666_v27  ;;  %v2729_v27 = vld [vmem:[%s3936_s1 + $0x214] ss:$8 sps:$4 sm:$0xff]  }
  0x34   :  { %689 = vmatprep.subr.bf16.mxu0 %v2667_v28  ;;  %v2727_v28 = vld [vmem:[%s3936_s1 + $0x210] ss:$8 sps:$4 sm:$0xff]  }
  0x37   :  { %690 = vmatpush1.bf16.msra.mxu0 %v2669_v29  ;;  %v2732_v29 = vld [vmem:[%s3936_s1 + $0x224] ss:$8 sps:$4 sm:$0xff]  }
  0x38   :  { %691 = vmatprep.subr.bf16.mxu0 %v2670_v30  ;;  %v2730_v30 = vld [vmem:[%s3936_s1 + $0x220] ss:$8 sps:$4 sm:$0xff]  }
  0x3b   :  { %692 = vmatpush1.bf16.msra.mxu0 %v2672_v31  ;;  %v2735_v31 = vld [vmem:[%s3936_s1 + $0x234] ss:$8 sps:$4 sm:$0xff]  }
  0x3c   :  { %693 = vmatprep.subr.bf16.mxu0 %v2673_v32  ;;  %v2733_v32 = vld [vmem:[%s3936_s1 + $0x230] ss:$8 sps:$4 sm:$0xff]  }
  0x3f   :  { %694 = vmatpush1.bf16.msra.mxu0 %v2675_v33  ;;  %v2738_v33 = vld [vmem:[%s3936_s1 + $0x244] ss:$8 sps:$4 sm:$0xff]  }
  0x40   :  { %704 = vmatprep.subr.bf16.mxu0 %v2678_v34  ;;  %v2736_v34 = vld [vmem:[%s3936_s1 + $0x240] ss:$8 sps:$4 sm:$0xff]  }
  0x42   :  { %696 = vmatmul.mubr.bf16.vlgmr.msra.gmra.mrb[0].mxu0 %v52_v37  ;;  %v2744_v37 = vld [vmem:[%s3936_s1 + $0x264] ss:$8 sps:$4 sm:$0xff]  }
  0x43   :  { %705 = vmatpush1.bf16.msra.mxu0 %v2676_v38  ;;  %736 = vmatprep.mubr.bf16.mxu0 %v55_v40  ;;  %v2742_v38 = vld [vmem:[%s3936_s1 + $0x260] ss:$8 sps:$4 sm:$0xff]  }
  0x44   :  { %706 = vmatprep.subr.bf16.mxu0 %v2681_v39  ;;  %v2747_v39 = vld [vmem:[%s3936_s1 + $0x274] ss:$8 sps:$4 sm:$0xff]   ;;  %v2785_v40 = vld [vmem:[%s3938_s3 + $0x68] sm:$0xff]  }
  0x45   :  { %2533 = vmatprep.subr.bf16.mxu1 %v2785_v40  ;;  %v2796_v40 = vld [vmem:[%s3941_s7 + $0x8] sm:$0xff]  }
  0x46   :  { %2534 = vmatpush3.bf16.msra.mxu1 %v2786_v61  ;;  %v2809_v61 = vld [vmem:[%s3943_s9 + $0x20] ss:$8 sps:$4 sm:$0xff]  }
  0x47   :  { %707 = vmatpush1.bf16.msra.mxu0 %v2679_v43  ;;  %v2750_v43 = vld [vmem:[%s3936_s1 + $0x284] ss:$8 sps:$4 sm:$0xff]   ;;  %2535 = vmatprep.subr.bf16.mxu1 %v2787_v62  ;;  %v2814_v62 = vld [vmem:[%s3943_s9 + $0x34] ss:$8 sps:$4 sm:$0xff]  }
  0x48   :  { %708 = vmatprep.subr.bf16.mxu0 %v2684_v45  ;;  %v2753_v45 = vld [vmem:[%s3936_s1 + $0x294] ss:$8 sps:$4 sm:$0xff]  }
  0x4b   :  { %709 = vmatpush1.bf16.msra.mxu0 %v2682_v49  ;;  %v2759_v49 = vld [vmem:[%s3936_s1 + $0x2b4] ss:$8 sps:$4 sm:$0xff]  }
  0x4c   :  { %710 = vmatprep.subr.bf16.mxu0 %v2687_v52  ;;  %v2760_v52 = vld [vmem:[%s3936_s1 + $0x2c0] ss:$8 sps:$4 sm:$0xff]  }
  0x4f   :  { %711 = vmatpush1.bf16.msra.mxu0 %v2685_v55  ;;  %v2768_v55 = vld [vmem:[%s3936_s1 + $0x2e4] ss:$8 sps:$4 sm:$0xff]  }
  0x50   :  { %712 = vmatprep.subr.bf16.mxu0 %v2690_v56  ;;  %v2766_v56 = vld [vmem:[%s3936_s1 + $0x2e0] ss:$8 sps:$4 sm:$0xff]  }
  0x53   :  { %713 = vmatpush1.bf16.msra.mxu0 %v2688_v58  ;;  %v2771_v58 = vld [vmem:[%s3936_s1 + $0x2f0] ss:$8 sps:$4 sm:$0xff]  }
  0x54   :  { %714 = vmatprep.subr.bf16.mxu0 %v2693_v60  ;;  %v56_v60 = vpack.c.bf16 %v49_v59, %v49_v59  ;;  %v2806_v59 = vld [vmem:[%s3943_s9 + $0x10] ss:$8 sps:$4 sm:$0xff]  }
  0x57   :  { %715 = vmatpush1.bf16.msra.mxu0 %v2691_v63  ;;  %v2788_v63 = vld [vmem:[%s3938_s3 + $0x30] sm:$0xff]  }
  0x58   :  { %716 = vmatprep.subr.bf16.mxu0 %v2696_v0  ;;  %2536 = vmatpush3.bf16.msra.mxu1 %v2788_v63  ;;  %v2817_v63 = vld [vmem:[%s3945_s11 + $0x4] ss:$28 sps:$4 sm:$0xff]  }
  0x59   :  { %2537 = vmatprep.subr.bf16.mxu1 %v2789_v1  ;;  %v2820_v1 = vld [vmem:[%s3945_s11 + $0x14] ss:$28 sps:$4 sm:$0xff]  }
  0x5b   :  { %717 = vmatpush1.bf16.msra.mxu0 %v2694_v2 }
  0x5c   :  { %718 = vmatprep.subr.bf16.mxu0 %v2699_v3  ;;  %v2790_v3 = vld [vmem:[%s3938_s3 + $0x38] sm:$0xff]  }
  0x5d   :  { %2538 = vmatpush3.bf16.msra.mxu1 %v2790_v3  ;;  %v2826_v3 = vld [vmem:[%s3945_s11 + $0x4c] ss:$28 sps:$4 sm:$0xff]  }
  0x5f   :  { %719 = vmatpush1.bf16.msra.mxu0 %v2697_v4 }
  0x60   :  { %720 = vmatprep.subr.bf16.mxu0 %v2702_v5 }
  0x63   :  { %721 = vmatpush1.bf16.msra.mxu0 %v2700_v6  ;;  %v3004_v6 = vmov 0.0  }
  0x64   :  { %722 = vmatprep.subr.bf16.mxu0 %v2705_v7  ;;  %2581 = vmatprep.subr.bf16.mxu1 %v3004_v6  ;;  %v159_v7 = vlaneseq }
  0x67   :  { %723 = vmatpush1.bf16.msra.mxu0 %v2703_v8  ;;  %v3442_v8 = vshrl.u32 %v159_v7, 7  ;;  %v2836_v7 = vld [vmem:[%s3945_s11 + $0xb8] ss:$28 sps:$4 sm:$0xff]  }
  0x68   :  { %724 = vmatprep.subr.bf16.mxu0 %v2708_v9 }
  0x69   :  { %v3445_v9 = vsub.s32 0, %v3442_v8 }
  0x6b   :  { %725 = vmatpush1.bf16.msra.mxu0 %v2706_v10  ;;  %v157_v10 = vld [vmem:[%s3940_s2] sm:$0x3] }
  0x6c   :  { %726 = vmatprep.subr.bf16.mxu0 %v2711_v11  ;;  %v3451_v11 = vsub.s32 1, %v3442_v8 }
  0x6f   :  { %727 = vmatpush1.bf16.msra.mxu0 %v2709_v12  ;;  %v162_v12 = vrot.slane %v157_v10, %v3445_v9 }
  0x70   :  { %728 = vmatprep.subr.bf16.mxu0 %v2714_v13  ;;  %v166_v13 = vrot.slane %v157_v10, %v3451_v11  ;;  %v2844_v10 = vld [vmem:[%s3945_s11 + $0xf4] ss:$28 sps:$4 sm:$0xff]  }
  0x73   :  { %729 = vmatpush1.bf16.msra.mxu0 %v2712_v14 }
  0x74   :  { %730 = vmatprep.subr.bf16.mxu0 %v2717_v15 }
  0x77   :  { %731 = vmatpush1.bf16.msra.mxu0 %v2715_v16 }
  0x78   :  { %732 = vmatprep.subr.bf16.mxu0 %v2720_v17 }
  0x7b   :  { %733 = vmatpush1.bf16.msra.mxu0 %v2718_v18 }
  0x7c   :  { %734 = vmatprep.subr.bf16.mxu0 %v2723_v19 }
  0x7f   :  { %735 = vmatpush1.bf16.msra.mxu0 %v2721_v20 }
  0x80   :  { %745 = vmatprep.subr.bf16.mxu0 %v2726_v22 }
  0x82   :  { %737 = vmatmul.mubr.bf16.vlgmr.msra.gmra.mrb[0].mxu0 %v54_v24 }
  0x83   :  { %746 = vmatpush1.bf16.msra.mxu0 %v2724_v25  ;;  %777 = vmatprep.mubr.bf16.mxu0 %v57_v26  ;;  %v2791_v25 = vld [vmem:[%s3939_s5] sm:$0xff]  }
  0x84   :  { %747 = vmatprep.subr.bf16.mxu0 %v2729_v27  ;;  %v2792_v27 = vld [vmem:[%s3939_s5 + $0x8] sm:$0xff]  }
  0x87   :  { %748 = vmatpush1.bf16.msra.mxu0 %v2727_v28  ;;  %v2793_v28 = vld [vmem:[%s3939_s5 + $0x10] sm:$0xff]  }
  0x88   :  { %749 = vmatprep.subr.bf16.mxu0 %v2732_v29  ;;  %v2794_v29 = vld [vmem:[%s3939_s5 + $0x18] sm:$0xff]  }
  0x8b   :  { %750 = vmatpush1.bf16.msra.mxu0 %v2730_v30 }
  0x8c   :  { %751 = vmatprep.subr.bf16.mxu0 %v2735_v31  ;;  %v2370_v31 = vld [vmem:[%s3942_s4] ss:$0 sm:$0xff] }
  0x8f   :  { %752 = vmatpush1.bf16.msra.mxu0 %v2733_v32 }
  0x90   :  { %753 = vmatprep.subr.bf16.mxu0 %v2738_v33 }
  0x93   :  { %754 = vmatpush1.bf16.msra.mxu0 %v2736_v34 }
  0x94   :  { %755 = vmatprep.subr.bf16.mxu0 %v2741_v35 }
  0x97   :  { %756 = vmatpush1.bf16.msra.mxu0 %v2739_v36 }
  0x98   :  { %757 = vmatprep.subr.bf16.mxu0 %v2744_v37 }
  0x9b   :  { %758 = vmatpush1.bf16.msra.mxu0 %v2742_v38  ;;  %v2795_v38 = vld [vmem:[%s3941_s7] sm:$0xff]  }
  0x9c   :  { %759 = vmatprep.subr.bf16.mxu0 %v2747_v39 }
  0x9f   :  { %760 = vmatpush1.bf16.msra.mxu0 %v2745_v41  ;;  %v2797_v41 = vld [vmem:[%s3941_s7 + $0x10] sm:$0xff]  }
  0xa0   :  { %761 = vmatprep.subr.bf16.mxu0 %v2750_v43  ;;  %v2798_v43 = vld [vmem:[%s3941_s7 + $0x18] sm:$0xff]  }
  0xa3   :  { %762 = vmatpush1.bf16.msra.mxu0 %v2748_v44  ;;  %v2799_v44 = vld [vmem:[%s3941_s7 + $0x20] sm:$0xff]  }
  0xa4   :  { %763 = vmatprep.subr.bf16.mxu0 %v2753_v45  ;;  %v2800_v45 = vld [vmem:[%s3941_s7 + $0x28] sm:$0xff]  }
  0xa7   :  { %764 = vmatpush1.bf16.msra.mxu0 %v2751_v46  ;;  %v2801_v46 = vld [vmem:[%s3941_s7 + $0x30] sm:$0xff]  }
  0xa8   :  { %765 = vmatprep.subr.bf16.mxu0 %v2756_v47  ;;  %v2802_v47 = vld [vmem:[%s3941_s7 + $0x38] sm:$0xff]  }
  0xab   :  { %766 = vmatpush1.bf16.msra.mxu0 %v2754_v48  ;;  %v2805_v48 = vld [vmem:[%s3943_s9 + $0x4] ss:$8 sps:$4 sm:$0xff]  }
  0xac   :  { %767 = vmatprep.subr.bf16.mxu0 %v2759_v49  ;;  %v2387_v49 = vld [vmem:[%s3944_s6] ss:$0 sm:$0xff] }
  0xaf   :  { %768 = vmatpush1.bf16.msra.mxu0 %v2757_v50 }
  0xb0   :  { %769 = vmatprep.subr.bf16.mxu0 %v2762_v51 }
  0xb3   :  { %770 = vmatpush1.bf16.msra.mxu0 %v2760_v52 }
  0xb4   :  { %771 = vmatprep.subr.bf16.mxu0 %v2765_v53 }
  0xb7   :  { %772 = vmatpush1.bf16.msra.mxu0 %v2763_v54 }
  0xb8   :  { %773 = vmatprep.subr.bf16.mxu0 %v2768_v55 }
  0xbb   :  { %774 = vmatpush1.bf16.msra.mxu0 %v2766_v56  ;;  %v2803_v56 = vld [vmem:[%s3943_s9] ss:$8 sps:$4 sm:$0xff]  }
  0xbc   :  { %775 = vmatprep.subr.bf16.mxu0 %v2773_v57 }
  0xbf   :  { %776 = vmatpush1.bf16.msra.mxu0 %v2771_v58  ;;  %v2808_v58 = vld [vmem:[%s3943_s9 + $0x14] ss:$8 sps:$4 sm:$0xff]  }
  0xc0   :  { %2137 = vmatprep.subr.bf16.mxu0 %v2820_v1  ;;  %v2893_v1 = vld [vmem:[%s3945_s11 + $0x2d8] ss:$28 sps:$4 sm:$0xff]  }
  0xc2   :  { %778 = vmatmul.mubr.bf16.vlgmr.msra.gmra.mrb[0].mxu0 %v56_v60  ;;  %v2811_v60 = vld [vmem:[%s3943_s9 + $0x24] ss:$8 sps:$4 sm:$0xff]  }
  0xe6   :  { %v820_v0 = vpop.f32.mrb[0].mxu1 }
  0xe7   :  { %v822_v2 = vpop.f32.mrb[1].mxu1 }
  0xe8   :  { %v824_v4 = vpop.f32.mrb[2].mxu1 }
  0xe9   :  { %v825_v5 = vpop.f32.mrb[3].mxu1  ;;  %v2832_v4 = vld [vmem:[%s3945_s11 + $0x84] ss:$28 sps:$4 sm:$0xff]  }
  0xea   :  { %v2830_v5 = vld [vmem:[%s3945_s11 + $0x80] ss:$28 sps:$4 sm:$0xff]  }
 0x195   :  { %v779_v14 = vpop.f32.mrb[0].mxu0 }
 0x196   :  { %v2613_v15 = vadd.f32 %v779_v14, %v162_v12  ;;  %v781_v16 = vpop.f32.mrb[1].mxu0  ;;  %v2842_v12 = vld [vmem:[%s3945_s11 + $0xf0] ss:$28 sps:$4 sm:$0xff]   ;;  %v2848_v14 = vld [vmem:[%s3945_s11 + $0x128] ss:$28 sps:$4 sm:$0xff]  }
 0x197   :  { %v2615_v17 = vadd.f32 %v781_v16, %v166_v13  ;;  %v783_v18 = vpop.f32.mrb[2].mxu0  ;;  %v2850_v13 = vld [vmem:[%s3945_s11 + $0x12c] ss:$28 sps:$4 sm:$0xff]   ;;  %v2854_v16 = vld [vmem:[%s3945_s11 + $0x160] ss:$28 sps:$4 sm:$0xff]  }
 0x198   :  { %v2614_v19 = vadd.f32 %v2613_v15, %v820_v0  ;;  %v784_v20 = vpop.f32.mrb[3].mxu0  ;;  %v2818_v0 = vld [vmem:[%s3945_s11 + $0x10] ss:$28 sps:$4 sm:$0xff]   ;;  %v2856_v15 = vld [vmem:[%s3945_s11 + $0x164] ss:$28 sps:$4 sm:$0xff]  }
 0x199   :  { %v2616_v21 = vadd.f32 %v2615_v17, %v822_v2  ;;  %v2824_v2 = vld [vmem:[%s3945_s11 + $0x48] ss:$28 sps:$4 sm:$0xff]   ;;  %2138 = vmatpush1.bf16.msra.mxu0 %v2818_v0  ;;  %v2862_v17 = vld [vmem:[%s3945_s11 + $0x19c] ss:$28 sps:$4 sm:$0xff]   ;;  %v2866_v20 = vld [vmem:[%s3945_s11 + $0x1d0] ss:$28 sps:$4 sm:$0xff]  }
 0x19a   :  { %v827_v22 = vmax.f32 %v2614_v19, 0.0  ;;  %2139 = vmatprep.subr.bf16.mxu0 %v2826_v3  ;;  %v2860_v18 = vld [vmem:[%s3945_s11 + $0x198] ss:$28 sps:$4 sm:$0xff]   ;;  %v2899_v3 = vld [vmem:[%s3945_s11 + $0x310] ss:$28 sps:$4 sm:$0xff]  }
 0x19b   :  { %v828_v23 = vmax.f32 %v2616_v21, 0.0  ;;  %v2868_v19 = vld [vmem:[%s3945_s11 + $0x1d4] ss:$28 sps:$4 sm:$0xff]   ;;  %v2874_v21 = vld [vmem:[%s3945_s11 + $0x20c] ss:$28 sps:$4 sm:$0xff]  }
 0x19c   :  { %v829_v26 = vpack.c.bf16 %v827_v22, %v827_v22  ;;  %v2872_v22 = vld [vmem:[%s3945_s11 + $0x208] ss:$28 sps:$4 sm:$0xff]   ;;  %v2895_v0 = vld [vmem:[%s3945_s11 + $0x2dc] ss:$28 sps:$4 sm:$0xff]  }
 0x19d   :  { %v830_v24 = vpack.c.bf16 %v828_v23, %v828_v23  ;;  %2140 = vmatpush1.bf16.msra.mxu0 %v2824_v2  ;;  %v2880_v23 = vld [vmem:[%s3945_s11 + $0x244] ss:$28 sps:$4 sm:$0xff]   ;;  %v2901_v2 = vld [vmem:[%s3945_s11 + $0x314] ss:$28 sps:$4 sm:$0xff]  }
 0x19e   :  { %2141 = vmatprep.subr.bf16.mxu0 %v2832_v4  ;;  %v2904_v4 = vld [vmem:[%s3945_s11 + $0x324] ss:$28 sps:$4 sm:$0xff]  }
 0x19f   :  { %998 = vmatprep.mubr.bf16.mxu1 %v830_v24  ;;  %v2878_v24 = vld [vmem:[%s3945_s11 + $0x240] ss:$28 sps:$4 sm:$0xff]  }
 0x1a0   :  { %999 = vmatmul.mubr.bf16.vlgmr.msra.gmra.mrb[4].mxu1 %v829_v26  ;;  %v2884_v26 = vld [vmem:[%s3945_s11 + $0x278] ss:$28 sps:$4 sm:$0xff]  }
 0x1a1   :  { %2582 = vmatpush3.bf16.msra.mxu1 %v2791_v25  ;;  %2589 = vmatprep.mubr.msk.bf16.mxu1 %vm3005_vm1, %v3004_v6  ;;  %v2886_v25 = vld [vmem:[%s3945_s11 + $0x27c] ss:$28 sps:$4 sm:$0xff]  }
 0x1a2   :  { %2583 = vmatprep.subr.bf16.mxu1 %v3004_v6  ;;  %2142 = vmatpush1.bf16.msra.mxu0 %v2830_v5  ;;  %v2902_v5 = vld [vmem:[%s3945_s11 + $0x320] ss:$28 sps:$4 sm:$0xff]  }
 0x1a5   :  { %2584 = vmatpush3.bf16.msra.mxu1 %v2792_v27  ;;  %v2892_v27 = vld [vmem:[%s3945_s11 + $0x2b4] ss:$28 sps:$4 sm:$0xff]  }
 0x1a6   :  { %2585 = vmatprep.subr.bf16.mxu1 %v3004_v6 }
 0x1a9   :  { %2586 = vmatpush3.bf16.msra.mxu1 %v2793_v28  ;;  %v2890_v28 = vld [vmem:[%s3945_s11 + $0x2b0] ss:$28 sps:$4 sm:$0xff]  }
 0x1aa   :  { %2587 = vmatprep.subr.bf16.mxu1 %v3004_v6 }
 0x1ad   :  { %2588 = vmatpush3.bf16.msra.mxu1 %v2794_v29  ;;  %v2898_v29 = vld [vmem:[%s3945_s11 + $0x2ec] ss:$28 sps:$4 sm:$0xff]  }
 0x1ae   :  { %2593 = vmatprep.subr.bf16.mxu1 %v3004_v6 }
 0x273   :  { %v2539_v30 = vpop.f32.mrb[4].mxu1 }
 0x274   :  { %v2540_v32 = vpop.f32.mrb[5].mxu1 }
 0x275   :  { %v2541_v33 = vadd.f32 %v2540_v32, %v2539_v30  ;;  %v2542_v34 = vpop.f32.mrb[6].mxu1  ;;  %v2896_v30 = vld [vmem:[%s3945_s11 + $0x2e8] ss:$28 sps:$4 sm:$0xff]  }
 0x276   :  { %v2543_v35 = vpop.f32.mrb[7].mxu1 }
 0x277   :  { %v1001_v36 = vadd.f32 %v2541_v33, %v2370_v31  ;;  %v2393_v31 = vld [vmem:[%s3946_s8] ss:$0 sm:$0xff] }
 0x279   :  { %v1006_v37 = vmax.f32 %v1001_v36, 0.0 }
 0x27b   :  { %v1007_v39 = vpack.c.bf16 %v1006_v37, %v1006_v37 }
 0x27d   :  { %2590 = vmatmul.mubr.msk.bf16.vlgmr.msra.gmra.mrb[8].mxu1 %vm1047_vm2, %v1007_v39 }
 0x27e   :  { %2594 = vmatpush3.bf16.msra.mxu1 %v2795_v38  ;;  %2609 = vmatprep.mubr.msk.bf16.mxu1 %vm3005_vm1, %v3004_v6  ;;  %v2815_v38 = vld [vmem:[%s3945_s11] ss:$28 sps:$4 sm:$0xff]  }
 0x27f   :  { %2595 = vmatprep.subr.bf16.mxu1 %v3004_v6 }
 0x282   :  { %2596 = vmatpush3.bf16.msra.mxu1 %v2796_v40  ;;  %v2823_v40 = vld [vmem:[%s3945_s11 + $0x3c] ss:$28 sps:$4 sm:$0xff]  }
 0x283   :  { %2597 = vmatprep.subr.bf16.mxu1 %v3004_v6 }
 0x286   :  { %2598 = vmatpush3.bf16.msra.mxu1 %v2797_v41  ;;  %v2821_v41 = vld [vmem:[%s3945_s11 + $0x38] ss:$28 sps:$4 sm:$0xff]  }
 0x287   :  { %2599 = vmatprep.subr.bf16.mxu1 %v3004_v6 }
 0x28a   :  { %2600 = vmatpush3.bf16.msra.mxu1 %v2798_v43  ;;  %v2829_v43 = vld [vmem:[%s3945_s11 + $0x74] ss:$28 sps:$4 sm:$0xff]  }
 0x28b   :  { %2601 = vmatprep.subr.bf16.mxu1 %v3004_v6 }
 0x28e   :  { %2602 = vmatpush3.bf16.msra.mxu1 %v2799_v44  ;;  %v2827_v44 = vld [vmem:[%s3945_s11 + $0x70] ss:$28 sps:$4 sm:$0xff]  }
 0x28f   :  { %2603 = vmatprep.subr.bf16.mxu1 %v3004_v6 }
 0x292   :  { %2604 = vmatpush3.bf16.msra.mxu1 %v2800_v45  ;;  %v2835_v45 = vld [vmem:[%s3945_s11 + $0xac] ss:$28 sps:$4 sm:$0xff]  }
 0x293   :  { %2605 = vmatprep.subr.bf16.mxu1 %v3004_v6 }
 0x296   :  { %2606 = vmatpush3.bf16.msra.mxu1 %v2801_v46  ;;  %v2833_v46 = vld [vmem:[%s3945_s11 + $0xa8] ss:$28 sps:$4 sm:$0xff]  }
 0x297   :  { %2607 = vmatprep.subr.bf16.mxu1 %v3004_v6  ;;  %v2838_v6 = vld [vmem:[%s3945_s11 + $0xbc] ss:$28 sps:$4 sm:$0xff]  }
 0x298   :  { %2143 = vmatprep.subr.bf16.mxu0 %v2838_v6  ;;  %v2907_v6 = vld [vmem:[%s3945_s11 + $0x34c] ss:$28 sps:$4 sm:$0xff]  }
 0x299   :  { %2144 = vmatpush1.bf16.msra.mxu0 %v2836_v7  ;;  %v2905_v7 = vld [vmem:[%s3945_s11 + $0x348] ss:$28 sps:$4 sm:$0xff]  }
 0x29a   :  { %2608 = vmatpush3.bf16.msra.mxu1 %v2802_v47  ;;  %2145 = vmatprep.subr.bf16.mxu0 %v2844_v10  ;;  %v2841_v47 = vld [vmem:[%s3945_s11 + $0xe4] ss:$28 sps:$4 sm:$0xff]   ;;  %v2910_v10 = vld [vmem:[%s3945_s11 + $0x35c] ss:$28 sps:$4 sm:$0xff]  }
 0x29b   :  { %1269 = vmatprep.subr.bf16.mxu1 %v2805_v48  ;;  %v2839_v48 = vld [vmem:[%s3945_s11 + $0xe0] ss:$28 sps:$4 sm:$0xff]  }
 0x29d   :  { %2146 = vmatpush1.bf16.msra.mxu0 %v2842_v12  ;;  %v2908_v12 = vld [vmem:[%s3945_s11 + $0x358] ss:$28 sps:$4 sm:$0xff]  }
 0x29e   :  { %2147 = vmatprep.subr.bf16.mxu0 %v2850_v13  ;;  %v2913_v13 = vld [vmem:[%s3945_s11 + $0xc] ss:$28 sps:$4 sm:$0xff]  }
 0x2a1   :  { %2148 = vmatpush1.bf16.msra.mxu0 %v2848_v14  ;;  %v1214_v14 = vld [vmem:[%s3947_s10] sm:$0x3] }
 0x2a2   :  { %2149 = vmatprep.subr.bf16.mxu0 %v2856_v15  ;;  %v1219_v15 = vrot.slane %v1214_v14, %v3445_v9 }
 0x2a5   :  { %2150 = vmatpush1.bf16.msra.mxu0 %v2854_v16  ;;  %v1223_v16 = vrot.slane %v1214_v14, %v3451_v11  ;;  %v3899_v14 = vld [vmem:[%s3948_s12] sm:$0x7f] }
 0x2a6   :  { %2151 = vmatprep.subr.bf16.mxu0 %v2862_v17 }
 0x2a9   :  { %2152 = vmatpush1.bf16.msra.mxu0 %v2860_v18 }
 0x2aa   :  { %2153 = vmatprep.subr.bf16.mxu0 %v2868_v19 }
 0x2ad   :  { %2154 = vmatpush1.bf16.msra.mxu0 %v2866_v20 }
 0x2ae   :  { %2155 = vmatprep.subr.bf16.mxu0 %v2874_v21 }
 0x2b1   :  { %2156 = vmatpush1.bf16.msra.mxu0 %v2872_v22 }
 0x2b2   :  { %2157 = vmatprep.subr.bf16.mxu0 %v2880_v23 }
 0x2b5   :  { %2158 = vmatpush1.bf16.msra.mxu0 %v2878_v24 }
 0x2b6   :  { %2159 = vmatprep.subr.bf16.mxu0 %v2886_v25 }
 0x2b9   :  { %2160 = vmatpush1.bf16.msra.mxu0 %v2884_v26  ;;  %v2911_v26 = vld [vmem:[%s3945_s11 + $0x8] ss:$28 sps:$4 sm:$0xff]  }
 0x2ba   :  { %2161 = vmatprep.subr.bf16.mxu0 %v2892_v27 }
 0x2bd   :  { %2162 = vmatpush1.bf16.msra.mxu0 %v2890_v28  ;;  %v2916_v28 = vld [vmem:[%s3945_s11 + $0x44] ss:$28 sps:$4 sm:$0xff]  }
 0x2be   :  { %2163 = vmatprep.subr.bf16.mxu0 %v2898_v29  ;;  %v2914_v29 = vld [vmem:[%s3945_s11 + $0x40] ss:$28 sps:$4 sm:$0xff]  }
 0x2c1   :  { %2164 = vmatpush1.bf16.msra.mxu0 %v2896_v30  ;;  %v2919_v30 = vld [vmem:[%s3945_s11 + $0x7c] ss:$28 sps:$4 sm:$0xff]  }
 0x2c2   :  { %2165 = vmatprep.subr.bf16.mxu0 %v2904_v4  ;;  %v2969_v4 = vld [vmem:[%s3945_s11 + $0x2f0] ss:$28 sps:$4 sm:$0xff]  }
 0x2c5   :  { %2166 = vmatpush1.bf16.msra.mxu0 %v2902_v5  ;;  %v2970_v5 = vld [vmem:[%s3945_s11 + $0x130] ss:$28 sps:$4 sm:$0xff]  }
 0x2c6   :  { %2167 = vmatprep.subr.bf16.mxu0 %v2910_v10  ;;  %v2973_v10 = vld [vmem:[%s3945_s11 + $0x360] ss:$28 sps:$4 sm:$0xff]  }
 0x2c9   :  { %2168 = vmatpush1.bf16.msra.mxu0 %v2908_v12  ;;  %v2974_v12 = vld [vmem:[%s3945_s11 + $0x1a0] ss:$28 sps:$4 sm:$0xff]  }
 0x350   :  { %v1085_v50 = vpop.f32.mrb[8].mxu1 }
 0x351   :  { %v1086_v51 = vadd.f32 %v2387_v49, %v1085_v50  ;;  %v2591_v52 = vpop.f32.mrb[9].mxu1  ;;  %v2847_v49 = vld [vmem:[%s3945_s11 + $0x11c] ss:$28 sps:$4 sm:$0xff]  }
 0x352   :  { %v1088_v53 = vpop.f32.mrb[10].mxu1  ;;  %v2845_v50 = vld [vmem:[%s3945_s11 + $0x118] ss:$28 sps:$4 sm:$0xff]   ;;  %v2851_v52 = vld [vmem:[%s3945_s11 + $0x150] ss:$28 sps:$4 sm:$0xff]  }
 0x353   :  { %v1091_v54 = vmax.f32 %v1086_v51, 0.0  ;;  %v2592_v55 = vpop.f32.mrb[11].mxu1  ;;  %v2853_v51 = vld [vmem:[%s3945_s11 + $0x154] ss:$28 sps:$4 sm:$0xff]   ;;  %v2859_v53 = vld [vmem:[%s3945_s11 + $0x18c] ss:$28 sps:$4 sm:$0xff]  }
 0x354   :  { %v2865_v55 = vld [vmem:[%s3945_s11 + $0x1c4] ss:$28 sps:$4 sm:$0xff]  }
 0x355   :  { %v1092_v57 = vpack.c.bf16 %v1091_v54, %v1091_v54  ;;  %v2857_v54 = vld [vmem:[%s3945_s11 + $0x188] ss:$28 sps:$4 sm:$0xff]  }
 0x357   :  { %2610 = vmatmul.mubr.bf16.vlgmr.msra.gmra.mrb[12].mxu1 %v1092_v57  ;;  %v2871_v57 = vld [vmem:[%s3945_s11 + $0x1fc] ss:$28 sps:$4 sm:$0xff]  }
 0x358   :  { %1270 = vmatpush1.bf16.msra.mxu1 %v2803_v56  ;;  %1301 = vmatprep.mubr.bf16.mxu1 %v3003_v42  ;;  %v2812_v42 = vld [vmem:[%s3943_s9 + $0x30] ss:$8 sps:$4 sm:$0xff]   ;;  %v2863_v56 = vld [vmem:[%s3945_s11 + $0x1c0] ss:$28 sps:$4 sm:$0xff]  }
 0x359   :  { %1271 = vmatprep.subr.bf16.mxu1 %v2808_v58  ;;  %v2869_v58 = vld [vmem:[%s3945_s11 + $0x1f8] ss:$28 sps:$4 sm:$0xff]  }
 0x35c   :  { %1272 = vmatpush1.bf16.msra.mxu1 %v2806_v59  ;;  %v2877_v59 = vld [vmem:[%s3945_s11 + $0x234] ss:$28 sps:$4 sm:$0xff]  }
 0x35d   :  { %1273 = vmatprep.subr.bf16.mxu1 %v2811_v60  ;;  %v2875_v60 = vld [vmem:[%s3945_s11 + $0x230] ss:$28 sps:$4 sm:$0xff]  }
 0x360   :  { %1274 = vmatpush1.bf16.msra.mxu1 %v2809_v61  ;;  %v2883_v61 = vld [vmem:[%s3945_s11 + $0x26c] ss:$28 sps:$4 sm:$0xff]  }
 0x361   :  { %1275 = vmatprep.subr.bf16.mxu1 %v2814_v62  ;;  %v2881_v62 = vld [vmem:[%s3945_s11 + $0x268] ss:$28 sps:$4 sm:$0xff]  }
 0x364   :  { %1276 = vmatpush1.bf16.msra.mxu1 %v2812_v42  ;;  %v2889_v42 = vld [vmem:[%s3945_s11 + $0x2a4] ss:$28 sps:$4 sm:$0xff]  }
 0x365   :  { %2055 = vmatprep.subr.bf16.mxu1 %v2817_v63  ;;  %v2887_v63 = vld [vmem:[%s3945_s11 + $0x2a0] ss:$28 sps:$4 sm:$0xff]  }
 0x42a   :  { %v1198_v32 = vpop.f32.mrb[12].mxu1 }
 0x42b   :  { %v1199_v33 = vadd.f32 %v2393_v31, %v1198_v32  ;;  %v2611_v34 = vpop.f32.mrb[13].mxu1  ;;  %v2917_v31 = vld [vmem:[%s3945_s11 + $0x78] ss:$28 sps:$4 sm:$0xff]  }
 0x42c   :  { %v1201_v35 = vpop.f32.mrb[14].mxu1  ;;  %v2922_v32 = vld [vmem:[%s3945_s11 + $0xb4] ss:$28 sps:$4 sm:$0xff]   ;;  %v2925_v34 = vld [vmem:[%s3945_s11 + $0xec] ss:$28 sps:$4 sm:$0xff]  }
 0x42d   :  { %v1204_v36 = vmax.f32 %v1199_v33, 0.0  ;;  %v2612_v37 = vpop.f32.mrb[15].mxu1  ;;  %v2920_v33 = vld [vmem:[%s3945_s11 + $0xb0] ss:$28 sps:$4 sm:$0xff]   ;;  %v2923_v35 = vld [vmem:[%s3945_s11 + $0xe8] ss:$28 sps:$4 sm:$0xff]  }
 0x42e   :  { %v2926_v37 = vld [vmem:[%s3945_s11 + $0x120] ss:$28 sps:$4 sm:$0xff]  }
 0x42f   :  { %v1205_v39 = vpack.c.bf16 %v1204_v36, %v1204_v36  ;;  %v2928_v36 = vld [vmem:[%s3945_s11 + $0x124] ss:$28 sps:$4 sm:$0xff]  }
 0x431   :  { %2410 = vmatmul.mubr.msk.bf16.vlgmr.msra.gmra.mrb[16].mxu1 %vm1047_vm2, %v1205_v39  ;;  %v2929_v39 = vld [vmem:[%s3945_s11 + $0x158] ss:$28 sps:$4 sm:$0xff]  }
 0x432   :  { %2056 = vmatpush1.bf16.msra.mxu1 %v2815_v38  ;;  %v2931_v38 = vld [vmem:[%s3945_s11 + $0x15c] ss:$28 sps:$4 sm:$0xff]  }
 0x433   :  { %2057 = vmatprep.subr.bf16.mxu1 %v2823_v40  ;;  %v2934_v40 = vld [vmem:[%s3945_s11 + $0x194] ss:$28 sps:$4 sm:$0xff]  }
 0x436   :  { %2058 = vmatpush1.bf16.msra.mxu1 %v2821_v41  ;;  %v2932_v41 = vld [vmem:[%s3945_s11 + $0x190] ss:$28 sps:$4 sm:$0xff]  }
 0x437   :  { %2059 = vmatprep.subr.bf16.mxu1 %v2829_v43  ;;  %v2937_v43 = vld [vmem:[%s3945_s11 + $0x1cc] ss:$28 sps:$4 sm:$0xff]  }
 0x43a   :  { %2060 = vmatpush1.bf16.msra.mxu1 %v2827_v44  ;;  %v2935_v44 = vld [vmem:[%s3945_s11 + $0x1c8] ss:$28 sps:$4 sm:$0xff]  }
 0x43b   :  { %2061 = vmatprep.subr.bf16.mxu1 %v2835_v45  ;;  %v2940_v45 = vld [vmem:[%s3945_s11 + $0x204] ss:$28 sps:$4 sm:$0xff]  }
 0x43e   :  { %2062 = vmatpush1.bf16.msra.mxu1 %v2833_v46  ;;  %v2938_v46 = vld [vmem:[%s3945_s11 + $0x200] ss:$28 sps:$4 sm:$0xff]  }
 0x43f   :  { %2063 = vmatprep.subr.bf16.mxu1 %v2841_v47  ;;  %v2943_v47 = vld [vmem:[%s3945_s11 + $0x23c] ss:$28 sps:$4 sm:$0xff]  }
 0x442   :  { %2064 = vmatpush1.bf16.msra.mxu1 %v2839_v48  ;;  %v2941_v48 = vld [vmem:[%s3945_s11 + $0x238] ss:$28 sps:$4 sm:$0xff]  }
 0x443   :  { %2065 = vmatprep.subr.bf16.mxu1 %v2847_v49  ;;  %v2946_v49 = vld [vmem:[%s3945_s11 + $0x274] ss:$28 sps:$4 sm:$0xff]  }
 0x446   :  { %2066 = vmatpush1.bf16.msra.mxu1 %v2845_v50  ;;  %v2944_v50 = vld [vmem:[%s3945_s11 + $0x270] ss:$28 sps:$4 sm:$0xff]  }
 0x447   :  { %2067 = vmatprep.subr.bf16.mxu1 %v2853_v51  ;;  %v2949_v51 = vld [vmem:[%s3945_s11 + $0x2ac] ss:$28 sps:$4 sm:$0xff]  }
 0x44a   :  { %2068 = vmatpush1.bf16.msra.mxu1 %v2851_v52  ;;  %v2947_v52 = vld [vmem:[%s3945_s11 + $0x2a8] ss:$28 sps:$4 sm:$0xff]  }
 0x44b   :  { %2069 = vmatprep.subr.bf16.mxu1 %v2859_v53  ;;  %v2952_v53 = vld [vmem:[%s3945_s11 + $0x2e4] ss:$28 sps:$4 sm:$0xff]  }
 0x44e   :  { %2070 = vmatpush1.bf16.msra.mxu1 %v2857_v54  ;;  %v2950_v54 = vld [vmem:[%s3945_s11 + $0x2e0] ss:$28 sps:$4 sm:$0xff]  }
 0x44f   :  { %2071 = vmatprep.subr.bf16.mxu1 %v2865_v55  ;;  %v2955_v55 = vld [vmem:[%s3945_s11 + $0x31c] ss:$28 sps:$4 sm:$0xff]  }
 0x452   :  { %2072 = vmatpush1.bf16.msra.mxu1 %v2863_v56  ;;  %v2953_v56 = vld [vmem:[%s3945_s11 + $0x318] ss:$28 sps:$4 sm:$0xff]  }
 0x453   :  { %2073 = vmatprep.subr.bf16.mxu1 %v2871_v57  ;;  %v2958_v57 = vld [vmem:[%s3945_s11 + $0x354] ss:$28 sps:$4 sm:$0xff]  }
 0x456   :  { %2074 = vmatpush1.bf16.msra.mxu1 %v2869_v58  ;;  %v2956_v58 = vld [vmem:[%s3945_s11 + $0x350] ss:$28 sps:$4 sm:$0xff]  }
 0x457   :  { %2075 = vmatprep.subr.bf16.mxu1 %v2877_v59  ;;  %v2959_v59 = vld [vmem:[%s3945_s11 + $0x1d8] ss:$28 sps:$4 sm:$0xff]  }
 0x45a   :  { %2076 = vmatpush1.bf16.msra.mxu1 %v2875_v60  ;;  %v2960_v60 = vld [vmem:[%s3945_s11 + $0x18] ss:$28 sps:$4 sm:$0xff]  }
 0x45b   :  { %2077 = vmatprep.subr.bf16.mxu1 %v2883_v61  ;;  %v2961_v61 = vld [vmem:[%s3945_s11 + $0x210] ss:$28 sps:$4 sm:$0xff]  }
 0x45e   :  { %2078 = vmatpush1.bf16.msra.mxu1 %v2881_v62  ;;  %v2962_v62 = vld [vmem:[%s3945_s11 + $0x50] ss:$28 sps:$4 sm:$0xff]  }
 0x45f   :  { %2079 = vmatprep.subr.bf16.mxu1 %v2889_v42  ;;  %v2963_v42 = vld [vmem:[%s3945_s11 + $0x248] ss:$28 sps:$4 sm:$0xff]  }
 0x462   :  { %2080 = vmatpush1.bf16.msra.mxu1 %v2887_v63  ;;  %v2964_v63 = vld [vmem:[%s3945_s11 + $0x88] ss:$28 sps:$4 sm:$0xff]  }
 0x463   :  { %2081 = vmatprep.subr.bf16.mxu1 %v2895_v0  ;;  %v2965_v0 = vld [vmem:[%s3945_s11 + $0x280] ss:$28 sps:$4 sm:$0xff]  }
 0x466   :  { %2082 = vmatpush1.bf16.msra.mxu1 %v2893_v1  ;;  %v2966_v1 = vld [vmem:[%s3945_s11 + $0xc0] ss:$28 sps:$4 sm:$0xff]  }
 0x467   :  { %2083 = vmatprep.subr.bf16.mxu1 %v2901_v2  ;;  %v2967_v2 = vld [vmem:[%s3945_s11 + $0x2b8] ss:$28 sps:$4 sm:$0xff]  }
 0x46a   :  { %2084 = vmatpush1.bf16.msra.mxu1 %v2899_v3  ;;  %v2968_v3 = vld [vmem:[%s3945_s11 + $0xf8] ss:$28 sps:$4 sm:$0xff]  }
 0x46b   :  { %2085 = vmatprep.subr.bf16.mxu1 %v2907_v6  ;;  %v2971_v6 = vld [vmem:[%s3945_s11 + $0x328] ss:$28 sps:$4 sm:$0xff]  }
 0x46e   :  { %2086 = vmatpush1.bf16.msra.mxu1 %v2905_v7  ;;  %v2972_v7 = vld [vmem:[%s3945_s11 + $0x168] ss:$28 sps:$4 sm:$0xff]  }
 0x46f   :  { %2096 = vmatprep.subr.bf16.mxu1 %v2913_v13  ;;  %v1462_v13 = vsub.s32 4, %v3442_v8 }
 0x504   :  { %v1303_v17 = vpop.f32.mrb[16].mxu1 }
 0x505   :  { %v1304_v18 = vadd.f32 %v1303_v17, %v1219_v15  ;;  %v1305_v19 = vpop.f32.mrb[17].mxu1  ;;  %v1466_v15 = vsub.s32 5, %v3442_v8  ;;  %v1463_v17 = vrot.slane %v3899_v14, %v1462_v13  ;;  %v1470_v13 = vsub.s32 6, %v3442_v8 }
 0x506   :  { %v1306_v20 = vadd.f32 %v1305_v19, %v1223_v16  ;;  %v1307_v21 = vpop.f32.mrb[18].mxu1  ;;  %v1447_v16 = vrot.slane %v3899_v14, %v3445_v9 }
 0x507   :  { %v1310_v22 = vmax.f32 %v1304_v18, 0.0  ;;  %v1308_v23 = vpop.f32.mrb[19].mxu1  ;;  %v1451_v18 = vrot.slane %v3899_v14, %v3451_v11  ;;  %v1467_v19 = vrot.slane %v3899_v14, %v1466_v15 }
 0x508   :  { %v1311_v24 = vmax.f32 %v1306_v20, 0.0 }
 0x509   :  { %v3747_v27 = vpack.c.bf16 %v1310_v22, %v1310_v22 }
 0x50a   :  { %v3742_v25 = vpack.c.bf16 %v1311_v24, %v1311_v24 }
 0x50c   :  { %2087 = vmatprep.mubr.bf16.mxu1 %v3742_v25  ;;  %2169 = vmatprep.mubr.bf16.mxu0 %v3742_v25 }
 0x50d   :  { %2088 = vmatmul.mubr.bf16.vlgmr.msra.gmra.mrb[20].mxu1 %v3747_v27  ;;  %2170 = vmatmul.mubr.bf16.vlgmr.msra.gmra.mrb[4].mxu0 %v3747_v27 }
 0x50e   :  { %2097 = vmatpush1.bf16.msra.mxu1 %v2911_v26  ;;  %2128 = vmatprep.mubr.bf16.mxu1 %v3742_v25 }
 0x50f   :  { %2098 = vmatprep.subr.bf16.mxu1 %v2916_v28 }
 0x512   :  { %2099 = vmatpush1.bf16.msra.mxu1 %v2914_v29 }
 0x513   :  { %2100 = vmatprep.subr.bf16.mxu1 %v2919_v30 }
 0x516   :  { %2101 = vmatpush1.bf16.msra.mxu1 %v2917_v31 }
 0x517   :  { %2102 = vmatprep.subr.bf16.mxu1 %v2922_v32 }
 0x51a   :  { %2103 = vmatpush1.bf16.msra.mxu1 %v2920_v33 }
 0x51b   :  { %2104 = vmatprep.subr.bf16.mxu1 %v2925_v34 }
 0x51e   :  { %2105 = vmatpush1.bf16.msra.mxu1 %v2923_v35 }
 0x51f   :  { %2106 = vmatprep.subr.bf16.mxu1 %v2928_v36 }
 0x522   :  { %2107 = vmatpush1.bf16.msra.mxu1 %v2926_v37 }
 0x523   :  { %2108 = vmatprep.subr.bf16.mxu1 %v2931_v38 }
 0x526   :  { %2109 = vmatpush1.bf16.msra.mxu1 %v2929_v39 }
 0x527   :  { %2110 = vmatprep.subr.bf16.mxu1 %v2934_v40 }
 0x52a   :  { %2111 = vmatpush1.bf16.msra.mxu1 %v2932_v41 }
 0x52b   :  { %2112 = vmatprep.subr.bf16.mxu1 %v2937_v43 }
 0x52e   :  { %2113 = vmatpush1.bf16.msra.mxu1 %v2935_v44 }
 0x52f   :  { %2114 = vmatprep.subr.bf16.mxu1 %v2940_v45 }
 0x532   :  { %2115 = vmatpush1.bf16.msra.mxu1 %v2938_v46 }
 0x533   :  { %2116 = vmatprep.subr.bf16.mxu1 %v2943_v47 }
 0x536   :  { %2117 = vmatpush1.bf16.msra.mxu1 %v2941_v48 }
 0x537   :  { %2118 = vmatprep.subr.bf16.mxu1 %v2946_v49 }
 0x53a   :  { %2119 = vmatpush1.bf16.msra.mxu1 %v2944_v50 }
 0x53b   :  { %2120 = vmatprep.subr.bf16.mxu1 %v2949_v51 }
 0x53e   :  { %2121 = vmatpush1.bf16.msra.mxu1 %v2947_v52 }
 0x53f   :  { %2122 = vmatprep.subr.bf16.mxu1 %v2952_v53 }
 0x542   :  { %2123 = vmatpush1.bf16.msra.mxu1 %v2950_v54 }
 0x543   :  { %2124 = vmatprep.subr.bf16.mxu1 %v2955_v55  ;;  %v1454_v55 = vsub.s32 2, %v3442_v8 }
 0x546   :  { %2125 = vmatpush1.bf16.msra.mxu1 %v2953_v56  ;;  %v1458_v56 = vsub.s32 3, %v3442_v8 }
 0x547   :  { %2126 = vmatprep.subr.bf16.mxu1 %v2958_v57  ;;  %v1455_v57 = vrot.slane %v3899_v14, %v1454_v55 }
 0x54a   :  { %2127 = vmatpush1.bf16.msra.mxu1 %v2956_v58  ;;  %v1459_v58 = vrot.slane %v3899_v14, %v1458_v56 }
 0x54b   :  { %2559 = vmatprep.subr.bf16.mxu1 %v2959_v59 }
 0x54d   :  { %2129 = vmatmul.mubr.bf16.vlgmr.msra.gmra.mrb[24].mxu1 %v3747_v27 }
 0x54e   :  { %2560 = vmatpush3.bf16.msra.mxu1 %v2960_v60  ;;  %2210 = vmatprep.mubr.bf16.mxu1 %v3742_v25 }
 0x54f   :  { %2561 = vmatprep.subr.bf16.mxu1 %v2961_v61 }
 0x552   :  { %2562 = vmatpush3.bf16.msra.mxu1 %v2962_v62 }
 0x553   :  { %2563 = vmatprep.subr.bf16.mxu1 %v2963_v42 }
 0x556   :  { %2564 = vmatpush3.bf16.msra.mxu1 %v2964_v63 }
 0x557   :  { %2565 = vmatprep.subr.bf16.mxu1 %v2965_v0 }
 0x55a   :  { %2566 = vmatpush3.bf16.msra.mxu1 %v2966_v1 }
 0x55b   :  { %2567 = vmatprep.subr.bf16.mxu1 %v2967_v2 }
 0x55e   :  { %2568 = vmatpush3.bf16.msra.mxu1 %v2968_v3 }
 0x55f   :  { %2569 = vmatprep.subr.bf16.mxu1 %v2969_v4 }
 0x562   :  { %2570 = vmatpush3.bf16.msra.mxu1 %v2970_v5 }
 0x563   :  { %2571 = vmatprep.subr.bf16.mxu1 %v2971_v6 }
 0x566   :  { %2572 = vmatpush3.bf16.msra.mxu1 %v2972_v7 }
 0x567   :  { %2573 = vmatprep.subr.bf16.mxu1 %v2973_v10 }
 0x56a   :  { %2574 = vmatpush3.bf16.msra.mxu1 %v2974_v12 }
 0x56d   :  { %2211 = vmatmul.mubr.bf16.vlgmr.msra.gmra.mrb[28].mxu1 %v3747_v27 }
 0x5e0   :  { %v2089_v20 = vpop.f32.mrb[20].mxu1  ;;  %v2171_v21 = vpop.f32.mrb[4].mxu0 }
 0x5e1   :  { %v2090_v22 = vadd.f32 %v2089_v20, %v1447_v16  ;;  %v2172_v23 = vadd.f32 %v2171_v21, %v1463_v17  ;;  %v2091_v24 = vpop.f32.mrb[21].mxu1  ;;  %v2173_v25 = vpop.f32.mrb[5].mxu0  ;;  %v1471_v17 = vrot.slane %v3899_v14, %v1470_v13 }
 0x5e2   :  { %v2092_v26 = vadd.f32 %v2091_v24, %v1451_v18  ;;  %v2174_v27 = vadd.f32 %v2173_v25, %v1467_v19  ;;  %v2093_v28 = vpop.f32.mrb[22].mxu1  ;;  %v2175_v29 = vpop.f32.mrb[6].mxu0 }
 0x5e3   :  { %v2218_v30 = vsub.f32 0.0, %v2090_v22  ;;  %v2222_v31 = vsub.f32 0.0, %v2172_v23  ;;  %v2094_v9 = vpop.f32.mrb[23].mxu1  ;;  %v2176_v32 = vpop.f32.mrb[7].mxu0 }
 0x5e4   :  { %v2219_v33 = vsub.f32 0.0, %v2092_v26  ;;  %v2223_v34 = vsub.f32 0.0, %v2174_v27 }
 0x5e5   :  { %v2225_v35 = vmin.f32 %v2218_v30, 30.0  ;;  %v2229_v11 = vmin.f32 %v2222_v31, 30.0 }
 0x5e6   :  { %v2226_v36 = vmin.f32 %v2219_v33, 30.0  ;;  %v2230_v37 = vmin.f32 %v2223_v34, 30.0 }
 0x5e7   :  { %v2232_v38 = vmul.f32 1.442695, %v2225_v35  ;;  %v2240_v39 = vmul.f32 1.442695, %v2229_v11 }
 0x5e8   :  { %v2234_v40 = vmul.f32 1.442695, %v2226_v36  ;;  %v2242_v41 = vmul.f32 1.442695, %v2230_v37 }
 0x5e9   :  { %2975 = vpow2.f32 %v2232_v38 }
 0x5ea   :  { %2977 = vpow2.f32 %v2240_v39 }
 0x5eb   :  { %2979 = vpow2.f32 %v2234_v40 }
 0x5ec   :  { %2981 = vpow2.f32 %v2242_v41 }
 0x5f3   :  { %v2976_v43 = vpop.eup %2975 }
 0x5f4   :  { %v2978_v44 = vpop.eup %2977  ;;  %v2246_v45 = vadd.f32 1.0, %v2976_v43 }
 0x5f5   :  { %v2980_v46 = vpop.eup %2979  ;;  %v2250_v47 = vadd.f32 1.0, %v2978_v44 }
 0x5f6   :  { %v2982_v48 = vpop.eup %2981  ;;  %2983 = vrcp.f32 %v2246_v45  ;;  %v2247_v49 = vadd.f32 1.0, %v2980_v46 }
 0x5f7   :  { %2985 = vrcp.f32 %v2250_v47  ;;  %v2251_v50 = vadd.f32 1.0, %v2982_v48 }
 0x5f8   :  { %2987 = vrcp.f32 %v2247_v49 }
 0x5f9   :  { %2989 = vrcp.f32 %v2251_v50 }
 0x600   :  { %v2984_v51 = vpop.eup %2983 }
 0x601   :  { %v2986_v52 = vpop.eup %2985  ;;  %2260 = vst [vmem:[%s3949_s13] sm:$0xff] %v2984_v51 }
 0x602   :  { %v2988_v53 = vpop.eup %2987  ;;  %2264 = vst [vmem:[%s3949_s13 + $0x20] sm:$0xff] %v2986_v52 }
 0x603   :  { %v2990_v54 = vpop.eup %2989  ;;  %2261 = vst [vmem:[%s3949_s13 + $0x8] sm:$0xff] %v2988_v53 }
 0x604   :  { %2265 = vst [vmem:[%s3949_s13 + $0x28] sm:$0xff] %v2990_v54 }
 0x620   :  { %v2130_v59 = vpop.f32.mrb[24].mxu1 }
 0x621   :  { %v2131_v60 = vadd.f32 %v2130_v59, %v1455_v57  ;;  %v2132_v61 = vpop.f32.mrb[25].mxu1 }
 0x622   :  { %v2133_v62 = vadd.f32 %v2132_v61, %v1459_v58  ;;  %v2134_v42 = vpop.f32.mrb[26].mxu1 }
 0x623   :  { %v2220_v63 = vsub.f32 0.0, %v2131_v60  ;;  %v2135_v0 = vpop.f32.mrb[27].mxu1 }
 0x624   :  { %v2221_v1 = vsub.f32 0.0, %v2133_v62 }
 0x625   :  { %v2227_v2 = vmin.f32 %v2220_v63, 30.0 }
 0x626   :  { %v2228_v3 = vmin.f32 %v2221_v1, 30.0 }
 0x627   :  { %v2236_v4 = vmul.f32 1.442695, %v2227_v2 }
 0x628   :  { %v2238_v5 = vmul.f32 1.442695, %v2228_v3 }
 0x629   :  { %2991 = vpow2.f32 %v2236_v4 }
 0x62a   :  { %2993 = vpow2.f32 %v2238_v5 }
 0x633   :  { %v2992_v6 = vpop.eup %2991 }
 0x634   :  { %v2994_v7 = vpop.eup %2993  ;;  %v2248_v10 = vadd.f32 1.0, %v2992_v6 }
 0x635   :  { %v2249_v12 = vadd.f32 1.0, %v2994_v7 }
 0x636   :  { %2995 = vrcp.f32 %v2248_v10 }
 0x637   :  { %2997 = vrcp.f32 %v2249_v12 }
 0x640   :  { %v2996_v15 = vpop.eup %2995  ;;  %v2575_v16 = vpop.f32.mrb[28].mxu1 }
 0x641   :  { %v2998_v18 = vpop.eup %2997  ;;  %2262 = vst [vmem:[%s3949_s13 + $0x10] sm:$0xff] %v2996_v15  ;;  %v2576_v19 = vpop.f32.mrb[29].mxu1 }
 0x642   :  { %2263 = vst [vmem:[%s3949_s13 + $0x18] sm:$0xff] %v2998_v18  ;;  %v2577_v20 = vadd.f32 %v2576_v19, %v2575_v16  ;;  %v2578_v21 = vpop.f32.mrb[30].mxu1 }
 0x643   :  { %v2579_v22 = vpop.f32.mrb[31].mxu1 }
 0x644   :  { %v2213_v23 = vadd.f32 %v2577_v20, %v1471_v17 }
 0x646   :  { %v2224_v24 = vsub.f32 0.0, %v2213_v23 }
 0x648   :  { %v2231_v8 = vmin.f32 %v2224_v24, 30.0 }
 0x64a   :  { %v2244_v25 = vmul.f32 1.442695, %v2231_v8 }
 0x64c   :  { %2999 = vpow2.f32 %v2244_v25 }
 0x656   :  { %v3000_v26 = vpop.eup %2999 }
 0x657   :  { %v2252_v14 = vadd.f32 1.0, %v3000_v26 }
 0x659   :  { %3001 = vrcp.f32 %v2252_v14 }
 0x663   :  { %v3002_v27 = vpop.eup %3001 }
 0x664   :  { %2266 = vst.msk [vmem:[%s3949_s13 + $0x30] sm:$0xff] %vm659_vm0, %v3002_v27 }

</bundles_post_ra>
